<compile_context>
chip_gen: v7x
topology: tpu7x:2x2x1
jax: 0.10.0
libtpu: 0.0.40
codegen_flags: <defaults>
</compile_context>

<pallas_src>
import functools
import numpy as np

import jax
import jax.numpy as jnp
from jax.experimental import pallas as pl
from jax.experimental.pallas import tpu as pltpu


# ----------------------------------------------------------------------------
# Helpers
# ----------------------------------------------------------------------------
def _round_up(x, m):
    return ((x + m - 1) // m) * m


def _is_const(x):
    return isinstance(x, (int, float))


def _mul(a, b):
    """a*b where either operand may be a python float; folds 0 / +-1."""
    if _is_const(a) and _is_const(b):
        return float(a) * float(b)
    if _is_const(a):
        a = float(a)
        if a == 0.0:
            return 0.0
        if a == 1.0:
            return b
        if a == -1.0:
            return -b
        return a * b
    if _is_const(b):
        return _mul(b, a)
    return a * b


def _add(a, b):
    """a+b where either operand may be a python float; folds exact zeros."""
    if _is_const(a) and _is_const(b):
        return float(a) + float(b)
    if _is_const(a) and float(a) == 0.0:
        return b
    if _is_const(b) and float(b) == 0.0:
        return a
    return a + b


# ----------------------------------------------------------------------------
# Pallas kernel
# ----------------------------------------------------------------------------
def _fk_kernel(q_ref, out_ref, *, joint_ABC, joint_t, joint_wn,
               link_R, link_t, n_chunks, chunk):
    # q_ref   : (nj, block_rows, 128)  joint angles, batch = (rows, lanes)
    # out_ref : (12, block_rows, 128)  row-major flattened top 3x4 of T_world
    nj = len(joint_wn)

    for ci in range(n_chunks):                      # independent 8-row chunks
        off = ci * chunk                            # static offset

        Tw = None                                   # 3x3 entries (float or array)
        Twt = None                                  # 3 translation entries
        for j in range(nj):
            A, B, C = joint_ABC[j]
            wn = joint_wn[j]
            th = q_ref[j, pl.ds(off, chunk), :]     # (chunk, 128) full vregs
            ang = th if wn == 1.0 else wn * th
            cth = jnp.cos(ang)
            sth = jnp.sin(ang)
            # T_j rotation = joints[j][:3,:3] @ Rodrigues = A + c*B + s*C
            TR = [[_add(_add(A[a][b], _mul(B[a][b], cth)), _mul(C[a][b], sth))
                   for b in range(3)] for a in range(3)]
            tj = joint_t[j]                         # translation of T_j (floats)
            if Tw is None:                          # seed with T_0
                Tw = TR
                Twt = [tj[0], tj[1], tj[2]]
            else:
                newR = [[_add(_add(_mul(Tw[a][0], TR[0][b]),
                                   _mul(Tw[a][1], TR[1][b])),
                              _mul(Tw[a][2], TR[2][b]))
                         for b in range(3)] for a in range(3)]
                newt = [_add(_add(_add(_mul(Tw[a][0], tj[0]),
                                       _mul(Tw[a][1], tj[1])),
                                  _mul(Tw[a][2], tj[2])), Twt[a])
                        for a in range(3)]
                Tw, Twt = newR, newt

        # World transform of the requested link: Tw @ link (constant frame).
        oR = [[_add(_add(_mul(Tw[a][0], link_R[0][b]),
                         _mul(Tw[a][1], link_R[1][b])),
                    _mul(Tw[a][2], link_R[2][b]))
               for b in range(3)] for a in range(3)]
        ot = [_add(_add(_add(_mul(Tw[a][0], link_t[0]),
                             _mul(Tw[a][1], link_t[1])),
                        _mul(Tw[a][2], link_t[2])), Twt[a])
              for a in range(3)]

        rows = (oR[0][0], oR[0][1], oR[0][2], ot[0],
                oR[1][0], oR[1][1], oR[1][2], ot[1],
                oR[2][0], oR[2][1], oR[2][2], ot[2])
        for r, v in enumerate(rows):
            if _is_const(v):                        # fully-constant entry
                v = jnp.full((chunk, 128), float(v), jnp.float32)
            out_ref[r, pl.ds(off, chunk), :] = v.astype(jnp.float32)


# ----------------------------------------------------------------------------
# Host-side constant folding (mirrors the fixed robot parameters)
# ----------------------------------------------------------------------------
def _precompute_constants(joints, links, joint_axis, idx):
    nj = idx + 1
    joints = np.asarray(joints, np.float64)
    links = np.asarray(links, np.float64)
    joint_axis = np.asarray(joint_axis, np.float64)

    ABC, ts, wns = [], [], []
    for j in range(nj):
        w = joint_axis[j]
        n2 = float(w @ w)
        assert n2 > 0.0, "zero-norm joint axis"
        wn = float(np.sqrt(n2))
        w_hat = np.array([[0.0, -w[2], w[1]],
                          [w[2], 0.0, -w[0]],
                          [-w[1], w[0], 0.0]])
        JR = joints[j, :3, :3]
        # joints[j][:3,:3] @ Rodrigues(w, th) = A + cos(|w|th)*B + sin(|w|th)*C
        A = JR @ (np.eye(3) + (w_hat @ w_hat) / n2)
        B = -(JR @ (w_hat @ w_hat)) / n2
        C = (JR @ w_hat) / wn
        for M in (A, B, C):
            M[np.abs(M) < 1e-12] = 0.0              # make zeros exact -> folds
        ABC.append(tuple(tuple(tuple(float(M[a, b]) for b in range(3))
                               for a in range(3)) for M in (A, B, C)))
        ts.append(tuple(float(joints[j, a, 3]) for a in range(3)))
        wns.append(wn)

    link_R = tuple(tuple(float(links[idx, a, b]) for b in range(3))
                   for a in range(3))
    link_t = tuple(float(links[idx, a, 3]) for a in range(3))
    return tuple(ABC), tuple(ts), tuple(wns), link_R, link_t


# ----------------------------------------------------------------------------
# Wrapper: ForwardKinematics.forward equivalent
# ----------------------------------------------------------------------------
def forward_kinematics(q, idx, joints, links, joint_axis):
    """q: (nb, nq); idx: static int; joints/links: (nq,4,4); joint_axis: (nq,3).
    Returns (nb, 4, 4) float32 world transforms of link `idx`."""
    nb, nq = q.shape
    assert 0 <= idx < nq
    nj = idx + 1

    joint_ABC, joint_t, joint_wn, link_R, link_t = _precompute_constants(
        joints, links, joint_axis, idx)

    # ---- lane-dense batch packing: (nj, rows_pad, 128) -----------------------
    CHUNK = 8
    rows = -(-nb // 128)                      # ceil(nb / 128)
    rows_c = _round_up(rows, CHUNK)
    if rows_c <= CHUNK:
        block_rows = CHUNK                    # single tiny tile
    else:
        # cap the slab at 64 rows (8192 batch elems) and keep >= 2 grid steps
        block_rows = min(64, max(CHUNK, (rows_c // 2) // CHUNK * CHUNK))
    rows_pad = _round_up(rows_c, block_rows)
    grid = rows_pad // block_rows
    nb_pad = rows_pad * 128

    q_t = jnp.transpose(q[:, :nj]).astype(jnp.float32)           # (nj, nb)
    q_t = jnp.pad(q_t, ((0, 0), (0, nb_pad - nb)))               # zero angles on pad
    q3 = q_t.reshape(nj, rows_pad, 128)

    kernel = functools.partial(
        _fk_kernel, joint_ABC=joint_ABC, joint_t=joint_t, joint_wn=joint_wn,
        link_R=link_R, link_t=link_t, n_chunks=block_rows // CHUNK, chunk=CHUNK)

    out = pl.pallas_call(
        kernel,
        grid=(grid,),
        in_specs=[pl.BlockSpec((nj, block_rows, 128), lambda i: (0, i, 0))],
        out_specs=pl.BlockSpec((12, block_rows, 128), lambda i: (0, i, 0)),
        out_shape=jax.ShapeDtypeStruct((12, rows_pad, 128), jnp.float32),
        compiler_params=pltpu.CompilerParams(
            dimension_semantics=("parallel",)),
    )(q3)                                                        # (12, rows_pad, 128)

    # Assemble (nb, 4, 4); the transpose is an XLA relayout — consumers that can
    # take batch-last (12, nb) should use `out` directly.
    flat = out.reshape(12, rows_pad * 128)[:, :nb]               # (12, nb)
    top = jnp.transpose(flat).reshape(nb, 3, 4)
    bottom = jnp.broadcast_to(
        jnp.asarray([0.0, 0.0, 0.0, 1.0], jnp.float32), (nb, 1, 4))
    return jnp.concatenate([top, bottom], axis=1)


# ----------------------------------------------------------------------------
# Parameter setup (mirrors ForwardKinematics.__init__) -- plain numpy glue
# ----------------------------------------------------------------------------
def _rpy_to_R(rpy_row):
    r, p, y = float(rpy_row[0]), float(rpy_row[1]), float(rpy_row[2])
    cr, sr = np.cos(r), np.sin(r)
    cp, sp = np.cos(p), np.sin(p)
    cy, sy = np.cos(y), np.sin(y)
    Rx = np.array([[1, 0, 0], [0, cr, -sr], [0, sr, cr]])
    Ry = np.array([[cp, 0, sp], [0, 1, 0], [-sp, 0, cp]])
    Rz = np.array([[cy, -sy, 0], [sy, cy, 0], [0, 0, 1]])
    return Rz @ Ry @ Rx


def make_frame_chain(xyz, rpy=None):
    xyz = np.asarray(xyz, dtype=np.float64)
    if rpy is None:
        rpy = np.zeros_like(xyz)
    rpy = np.asarray(rpy, dtype=np.float64)
    Ts = []
    for i in range(xyz.shape[0]):
        T = np.eye(4)
        T[:3, :3] = _rpy_to_R(rpy[i])
        T[:3, 3] = xyz[i]
        Ts.append(T)
    return np.stack(Ts).astype(np.float32)      # (n, 4, 4)


# ----------------------------------------------------------------------------
# Pure numpy reference for verification
# ----------------------------------------------------------------------------
def fk_reference(q, idx, joints, links, joint_axis):
    q = np.asarray(q, np.float64)
    joints = np.asarray(joints, np.float64)
    links = np.asarray(links, np.float64)
    joint_axis = np.asarray(joint_axis, np.float64)
    nb = q.shape[0]
    out = np.zeros((nb, 4, 4))
    for b in range(nb):
        Tw = np.eye(4)
        for j in range(idx + 1):
            w = joint_axis[j]
            th = q[b, j]
            wn = np.linalg.norm(w)
            w_hat = np.array([[0, -w[2], w[1]],
                              [w[2], 0, -w[0]],
                              [-w[1], w[0], 0]])
            R = np.eye(3) + np.sin(wn * th) / wn * w_hat \
                + (1 - np.cos(wn * th)) / wn ** 2 * (w_hat @ w_hat)
            Tq = np.eye(4)
            Tq[:3, :3] = R
            Tw = Tw @ (joints[j] @ Tq)
        out[b] = Tw @ links[idx]
    return out.astype(np.float32)


# ----------------------------------------------------------------------------
if __name__ == "__main__":
    key = jax.random.PRNGKey(0)
    k1, k2, k3, k4, k5 = jax.random.split(key, 5)

    nq = 8
    joint_xyz = np.asarray(jax.random.uniform(k1, (nq, 3), minval=-0.2, maxval=0.2))
    joint_rpy = np.asarray(jax.random.uniform(k2, (nq, 3), minval=-0.5, maxval=0.5))
    link_xyz = np.asarray(jax.random.uniform(k3, (nq, 3), minval=-0.2, maxval=0.2))

    # Mostly unit coordinate axes (max trace-time folding) plus two general
    # axes to exercise the |w| != 1 / dense-axis paths.
    joint_axis = np.eye(3, dtype=np.float64)[np.arange(nq) % 3]
    joint_axis[2] = np.array([1.0, 1.0, 0.0])
    joint_axis[5] = np.array([0.3, -0.5, 0.8])

    # parameters built as in ForwardKinematics.__init__
    joints = make_frame_chain(joint_xyz, joint_rpy)   # (nq, 4, 4)
    links = make_frame_chain(link_xyz)                # (nq, 4, 4)

    # Case 1: small batch (module-spec scale), partial chain.
    nb, idx = 2, 5
    q = jax.random.uniform(k4, (nb, nq), minval=-np.pi, maxval=np.pi)
    T_out = jax.block_until_ready(forward_kinematics(q, idx, joints, links, joint_axis))
    T_ref = fk_reference(np.asarray(q), idx, joints, links, joint_axis)
    np.testing.assert_allclose(np.asarray(T_out), T_ref, rtol=1e-4, atol=1e-4)

    # Case 2: non-multiple-of-128 batch (exercises lane padding), full chain.
    nb2, idx2 = 300, nq - 1
    q2 = jax.random.uniform(k5, (nb2, nq), minval=-np.pi, maxval=np.pi)
    T_out2 = jax.block_until_ready(forward_kinematics(q2, idx2, joints, links, joint_axis))
    T_ref2 = fk_reference(np.asarray(q2), idx2, joints, links, joint_axis)
    np.testing.assert_allclose(np.asarray(T_out2), T_ref2, rtol=1e-4, atol=1e-4)

    print("KERNEL_OK")
</pallas_src>

<mosaic_0001>
module attributes {stable_mosaic.version = 11 : i64} {
  func.func @_fk_kernel(%arg0: i32, %arg1: memref<6x8x128xf32, #tpu.memory_space<vmem>>, %arg2: memref<12x8x128xf32, #tpu.memory_space<vmem>>) attributes {dimension_semantics = [#tpu.dimension_semantics<parallel>], iteration_bounds = array<i64: 1>, scalar_prefetch = 0 : i64, scratch_operands = 0 : i64, tpu.core_type = #tpu.core_type<tc>, window_params = [{transform_indices = @transform_0, window_bounds = array<i64: 6, 8, 128>}, {transform_indices = @transform_1, window_bounds = array<i64: 12, 8, 128>}]} {
    %c0 = arith.constant 0 : index
    %c0_0 = arith.constant 0 : index
    %c0_1 = arith.constant 0 : index
    %0 = vector.load %arg1[%c0, %c0_0, %c0_1] : memref<6x8x128xf32, #tpu.memory_space<vmem>>, vector<1x8x128xf32>
    %1 = vector.shape_cast %0 : vector<1x8x128xf32> to vector<8x128xf32>
    %2 = math.cos %1 : vector<8x128xf32>
    %3 = math.sin %1 : vector<8x128xf32>
    %cst = arith.constant 0.145668522 : f32
    %4 = vector.broadcast %cst : f32 to vector<8x128xf32>
    %5 = arith.mulf %4, %2 : vector<8x128xf32>
    %cst_2 = arith.constant -0.443284154 : f32
    %6 = vector.broadcast %cst_2 : f32 to vector<8x128xf32>
    %7 = arith.mulf %6, %3 : vector<8x128xf32>
    %8 = arith.addf %5, %7 : vector<8x128xf32>
    %cst_3 = arith.constant -0.443284154 : f32
    %9 = vector.broadcast %cst_3 : f32 to vector<8x128xf32>
    %10 = arith.mulf %9, %2 : vector<8x128xf32>
    %cst_4 = arith.constant -0.145668522 : f32
    %11 = vector.broadcast %cst_4 : f32 to vector<8x128xf32>
    %12 = arith.mulf %11, %3 : vector<8x128xf32>
    %13 = arith.addf %10, %12 : vector<8x128xf32>
    %cst_5 = arith.constant 0.895872533 : f32
    %14 = vector.broadcast %cst_5 : f32 to vector<8x128xf32>
    %15 = arith.mulf %14, %2 : vector<8x128xf32>
    %cst_6 = arith.constant 0.438409299 : f32
    %16 = vector.broadcast %cst_6 : f32 to vector<8x128xf32>
    %17 = arith.mulf %16, %3 : vector<8x128xf32>
    %18 = arith.addf %15, %17 : vector<8x128xf32>
    %cst_7 = arith.constant 0.438409299 : f32
    %19 = vector.broadcast %cst_7 : f32 to vector<8x128xf32>
    %20 = arith.mulf %19, %2 : vector<8x128xf32>
    %cst_8 = arith.constant -0.895872533 : f32
    %21 = vector.broadcast %cst_8 : f32 to vector<8x128xf32>
    %22 = arith.mulf %21, %3 : vector<8x128xf32>
    %23 = arith.addf %20, %22 : vector<8x128xf32>
    %cst_9 = arith.constant -0.419753671 : f32
    %24 = vector.broadcast %cst_9 : f32 to vector<8x128xf32>
    %25 = arith.mulf %24, %2 : vector<8x128xf32>
    %cst_10 = arith.constant 0.78185451 : f32
    %26 = vector.broadcast %cst_10 : f32 to vector<8x128xf32>
    %27 = arith.mulf %26, %3 : vector<8x128xf32>
    %28 = arith.addf %25, %27 : vector<8x128xf32>
    %cst_11 = arith.constant 0.78185451 : f32
    %29 = vector.broadcast %cst_11 : f32 to vector<8x128xf32>
    %30 = arith.mulf %29, %2 : vector<8x128xf32>
    %cst_12 = arith.constant 0.419753671 : f32
    %31 = vector.broadcast %cst_12 : f32 to vector<8x128xf32>
    %32 = arith.mulf %31, %3 : vector<8x128xf32>
    %33 = arith.addf %30, %32 : vector<8x128xf32>
    %c1 = arith.constant 1 : index
    %c0_13 = arith.constant 0 : index
    %c0_14 = arith.constant 0 : index
    %34 = vector.load %arg1[%c1, %c0_13, %c0_14] : memref<6x8x128xf32, #tpu.memory_space<vmem>>, vector<1x8x128xf32>
    %35 = vector.shape_cast %34 : vector<1x8x128xf32> to vector<8x128xf32>
    %36 = math.cos %35 : vector<8x128xf32>
    %37 = math.sin %35 : vector<8x128xf32>
    %cst_15 = arith.constant 0.893019556 : f32
    %38 = vector.broadcast %cst_15 : f32 to vector<8x128xf32>
    %39 = arith.mulf %38, %36 : vector<8x128xf32>
    %cst_16 = arith.constant 0.20026283 : f32
    %40 = vector.broadcast %cst_16 : f32 to vector<8x128xf32>
    %41 = arith.mulf %40, %37 : vector<8x128xf32>
    %42 = arith.addf %39, %41 : vector<8x128xf32>
    %cst_17 = arith.constant -0.20026283 : f32
    %43 = vector.broadcast %cst_17 : f32 to vector<8x128xf32>
    %44 = arith.mulf %43, %36 : vector<8x128xf32>
    %cst_18 = arith.constant 0.893019556 : f32
    %45 = vector.broadcast %cst_18 : f32 to vector<8x128xf32>
    %46 = arith.mulf %45, %37 : vector<8x128xf32>
    %47 = arith.addf %44, %46 : vector<8x128xf32>
    %cst_19 = arith.constant -0.357420504 : f32
    %48 = vector.broadcast %cst_19 : f32 to vector<8x128xf32>
    %49 = arith.mulf %48, %36 : vector<8x128xf32>
    %cst_20 = arith.constant -0.228497103 : f32
    %50 = vector.broadcast %cst_20 : f32 to vector<8x128xf32>
    %51 = arith.mulf %50, %37 : vector<8x128xf32>
    %52 = arith.addf %49, %51 : vector<8x128xf32>
    %cst_21 = arith.constant 0.228497103 : f32
    %53 = vector.broadcast %cst_21 : f32 to vector<8x128xf32>
    %54 = arith.mulf %53, %36 : vector<8x128xf32>
    %cst_22 = arith.constant -0.357420504 : f32
    %55 = vector.broadcast %cst_22 : f32 to vector<8x128xf32>
    %56 = arith.mulf %55, %37 : vector<8x128xf32>
    %57 = arith.addf %54, %56 : vector<8x128xf32>
    %cst_23 = arith.constant 0.273434967 : f32
    %58 = vector.broadcast %cst_23 : f32 to vector<8x128xf32>
    %59 = arith.mulf %58, %36 : vector<8x128xf32>
    %cst_24 = arith.constant -0.952724456 : f32
    %60 = vector.broadcast %cst_24 : f32 to vector<8x128xf32>
    %61 = arith.mulf %60, %37 : vector<8x128xf32>
    %62 = arith.addf %59, %61 : vector<8x128xf32>
    %cst_25 = arith.constant 0.952724456 : f32
    %63 = vector.broadcast %cst_25 : f32 to vector<8x128xf32>
    %64 = arith.mulf %63, %36 : vector<8x128xf32>
    %cst_26 = arith.constant 0.273434967 : f32
    %65 = vector.broadcast %cst_26 : f32 to vector<8x128xf32>
    %66 = arith.mulf %65, %37 : vector<8x128xf32>
    %67 = arith.addf %64, %66 : vector<8x128xf32>
    %cst_27 = arith.constant 0.884465873 : f32
    %68 = vector.broadcast %cst_27 : f32 to vector<8x128xf32>
    %69 = arith.mulf %68, %42 : vector<8x128xf32>
    %70 = arith.mulf %8, %52 : vector<8x128xf32>
    %71 = arith.addf %69, %70 : vector<8x128xf32>
    %72 = arith.mulf %13, %62 : vector<8x128xf32>
    %73 = arith.addf %71, %72 : vector<8x128xf32>
    %cst_28 = arith.constant 0.905560433 : f32
    %74 = vector.broadcast %cst_28 : f32 to vector<8x128xf32>
    %75 = arith.mulf %74, %8 : vector<8x128xf32>
    %cst_29 = arith.constant 0.356441826 : f32
    %76 = vector.broadcast %cst_29 : f32 to vector<8x128xf32>
    %77 = arith.addf %76, %75 : vector<8x128xf32>
    %cst_30 = arith.constant -0.132474333 : f32
    %78 = vector.broadcast %cst_30 : f32 to vector<8x128xf32>
    %79 = arith.mulf %78, %13 : vector<8x128xf32>
    %80 = arith.addf %77, %79 : vector<8x128xf32>
    %cst_31 = arith.constant 0.884465873 : f32
    %81 = vector.broadcast %cst_31 : f32 to vector<8x128xf32>
    %82 = arith.mulf %81, %47 : vector<8x128xf32>
    %83 = arith.mulf %8, %57 : vector<8x128xf32>
    %84 = arith.addf %82, %83 : vector<8x128xf32>
    %85 = arith.mulf %13, %67 : vector<8x128xf32>
    %86 = arith.addf %84, %85 : vector<8x128xf32>
    %cst_32 = arith.constant 0.0721785501 : f32
    %87 = vector.broadcast %cst_32 : f32 to vector<8x128xf32>
    %88 = arith.mulf %87, %42 : vector<8x128xf32>
    %89 = arith.mulf %18, %52 : vector<8x128xf32>
    %90 = arith.addf %88, %89 : vector<8x128xf32>
    %91 = arith.mulf %23, %62 : vector<8x128xf32>
    %92 = arith.addf %90, %91 : vector<8x128xf32>
    %cst_33 = arith.constant 0.905560433 : f32
    %93 = vector.broadcast %cst_33 : f32 to vector<8x128xf32>
    %94 = arith.mulf %93, %18 : vector<8x128xf32>
    %cst_34 = arith.constant 0.0290881246 : f32
    %95 = vector.broadcast %cst_34 : f32 to vector<8x128xf32>
    %96 = arith.addf %95, %94 : vector<8x128xf32>
    %cst_35 = arith.constant -0.132474333 : f32
    %97 = vector.broadcast %cst_35 : f32 to vector<8x128xf32>
    %98 = arith.mulf %97, %23 : vector<8x128xf32>
    %99 = arith.addf %96, %98 : vector<8x128xf32>
    %cst_36 = arith.constant 0.0721785501 : f32
    %100 = vector.broadcast %cst_36 : f32 to vector<8x128xf32>
    %101 = arith.mulf %100, %47 : vector<8x128xf32>
    %102 = arith.mulf %18, %57 : vector<8x128xf32>
    %103 = arith.addf %101, %102 : vector<8x128xf32>
    %104 = arith.mulf %23, %67 : vector<8x128xf32>
    %105 = arith.addf %103, %104 : vector<8x128xf32>
    %cst_37 = arith.constant 0.460988522 : f32
    %106 = vector.broadcast %cst_37 : f32 to vector<8x128xf32>
    %107 = arith.mulf %106, %42 : vector<8x128xf32>
    %108 = arith.mulf %28, %52 : vector<8x128xf32>
    %109 = arith.addf %107, %108 : vector<8x128xf32>
    %110 = arith.mulf %33, %62 : vector<8x128xf32>
    %111 = arith.addf %109, %110 : vector<8x128xf32>
    %cst_38 = arith.constant 0.905560433 : f32
    %112 = vector.broadcast %cst_38 : f32 to vector<8x128xf32>
    %113 = arith.mulf %112, %28 : vector<8x128xf32>
    %cst_39 = arith.constant 0.185779452 : f32
    %114 = vector.broadcast %cst_39 : f32 to vector<8x128xf32>
    %115 = arith.addf %114, %113 : vector<8x128xf32>
    %cst_40 = arith.constant -0.132474333 : f32
    %116 = vector.broadcast %cst_40 : f32 to vector<8x128xf32>
    %117 = arith.mulf %116, %33 : vector<8x128xf32>
    %118 = arith.addf %115, %117 : vector<8x128xf32>
    %cst_41 = arith.constant 0.460988522 : f32
    %119 = vector.broadcast %cst_41 : f32 to vector<8x128xf32>
    %120 = arith.mulf %119, %47 : vector<8x128xf32>
    %121 = arith.mulf %28, %57 : vector<8x128xf32>
    %122 = arith.addf %120, %121 : vector<8x128xf32>
    %123 = arith.mulf %33, %67 : vector<8x128xf32>
    %124 = arith.addf %122, %123 : vector<8x128xf32>
    %cst_42 = arith.constant -0.123274617 : f32
    %125 = vector.broadcast %cst_42 : f32 to vector<8x128xf32>
    %126 = arith.mulf %125, %8 : vector<8x128xf32>
    %cst_43 = arith.constant -0.134182096 : f32
    %127 = vector.broadcast %cst_43 : f32 to vector<8x128xf32>
    %128 = arith.addf %127, %126 : vector<8x128xf32>
    %cst_44 = arith.constant 0.0888060107 : f32
    %129 = vector.broadcast %cst_44 : f32 to vector<8x128xf32>
    %130 = arith.mulf %129, %13 : vector<8x128xf32>
    %131 = arith.addf %128, %130 : vector<8x128xf32>
    %cst_45 = arith.constant 0.136925653 : f32
    %132 = vector.broadcast %cst_45 : f32 to vector<8x128xf32>
    %133 = arith.addf %131, %132 : vector<8x128xf32>
    %cst_46 = arith.constant -0.123274617 : f32
    %134 = vector.broadcast %cst_46 : f32 to vector<8x128xf32>
    %135 = arith.mulf %134, %18 : vector<8x128xf32>
    %cst_47 = arith.constant -0.01095019 : f32
    %136 = vector.broadcast %cst_47 : f32 to vector<8x128xf32>
    %137 = arith.addf %136, %135 : vector<8x128xf32>
    %cst_48 = arith.constant 0.0888060107 : f32
    %138 = vector.broadcast %cst_48 : f32 to vector<8x128xf32>
    %139 = arith.mulf %138, %23 : vector<8x128xf32>
    %140 = arith.addf %137, %139 : vector<8x128xf32>
    %cst_49 = arith.constant -0.127048537 : f32
    %141 = vector.broadcast %cst_49 : f32 to vector<8x128xf32>
    %142 = arith.addf %140, %141 : vector<8x128xf32>
    %cst_50 = arith.constant -0.123274617 : f32
    %143 = vector.broadcast %cst_50 : f32 to vector<8x128xf32>
    %144 = arith.mulf %143, %28 : vector<8x128xf32>
    %cst_51 = arith.constant -0.0699364543 : f32
    %145 = vector.broadcast %cst_51 : f32 to vector<8x128xf32>
    %146 = arith.addf %145, %144 : vector<8x128xf32>
    %cst_52 = arith.constant 0.0888060107 : f32
    %147 = vector.broadcast %cst_52 : f32 to vector<8x128xf32>
    %148 = arith.mulf %147, %33 : vector<8x128xf32>
    %149 = arith.addf %146, %148 : vector<8x128xf32>
    %cst_53 = arith.constant -0.109128766 : f32
    %150 = vector.broadcast %cst_53 : f32 to vector<8x128xf32>
    %151 = arith.addf %149, %150 : vector<8x128xf32>
    %c2 = arith.constant 2 : index
    %c0_54 = arith.constant 0 : index
    %c0_55 = arith.constant 0 : index
    %152 = vector.load %arg1[%c2, %c0_54, %c0_55] : memref<6x8x128xf32, #tpu.memory_space<vmem>>, vector<1x8x128xf32>
    %153 = vector.shape_cast %152 : vector<1x8x128xf32> to vector<8x128xf32>
    %cst_56 = arith.constant 1.41421354 : f32
    %154 = vector.broadcast %cst_56 : f32 to vector<8x128xf32>
    %155 = arith.mulf %154, %153 : vector<8x128xf32>
    %156 = math.cos %155 : vector<8x128xf32>
    %157 = math.sin %155 : vector<8x128xf32>
    %cst_57 = arith.constant 0.292671084 : f32
    %158 = vector.broadcast %cst_57 : f32 to vector<8x128xf32>
    %159 = arith.mulf %158, %156 : vector<8x128xf32>
    %cst_58 = arith.constant 0.620168745 : f32
    %160 = vector.broadcast %cst_58 : f32 to vector<8x128xf32>
    %161 = arith.addf %160, %159 : vector<8x128xf32>
    %cst_59 = arith.constant -0.172436446 : f32
    %162 = vector.broadcast %cst_59 : f32 to vector<8x128xf32>
    %163 = arith.mulf %162, %157 : vector<8x128xf32>
    %164 = arith.addf %161, %163 : vector<8x128xf32>
    %cst_60 = arith.constant -0.292671084 : f32
    %165 = vector.broadcast %cst_60 : f32 to vector<8x128xf32>
    %166 = arith.mulf %165, %156 : vector<8x128xf32>
    %cst_61 = arith.constant 0.620168745 : f32
    %167 = vector.broadcast %cst_61 : f32 to vector<8x128xf32>
    %168 = arith.addf %167, %166 : vector<8x128xf32>
    %cst_62 = arith.constant 0.172436446 : f32
    %169 = vector.broadcast %cst_62 : f32 to vector<8x128xf32>
    %170 = arith.mulf %169, %157 : vector<8x128xf32>
    %171 = arith.addf %168, %170 : vector<8x128xf32>
    %cst_63 = arith.constant 0.243861958 : f32
    %172 = vector.broadcast %cst_63 : f32 to vector<8x128xf32>
    %173 = arith.mulf %172, %156 : vector<8x128xf32>
    %cst_64 = arith.constant 0.413899392 : f32
    %174 = vector.broadcast %cst_64 : f32 to vector<8x128xf32>
    %175 = arith.mulf %174, %157 : vector<8x128xf32>
    %176 = arith.addf %173, %175 : vector<8x128xf32>
    %cst_65 = arith.constant -0.631755828 : f32
    %177 = vector.broadcast %cst_65 : f32 to vector<8x128xf32>
    %178 = arith.mulf %177, %156 : vector<8x128xf32>
    %cst_66 = arith.constant 0.24042967 : f32
    %179 = vector.broadcast %cst_66 : f32 to vector<8x128xf32>
    %180 = arith.addf %179, %178 : vector<8x128xf32>
    %cst_67 = arith.constant -0.20755285 : f32
    %181 = vector.broadcast %cst_67 : f32 to vector<8x128xf32>
    %182 = arith.mulf %181, %157 : vector<8x128xf32>
    %183 = arith.addf %180, %182 : vector<8x128xf32>
    %cst_68 = arith.constant 0.631755828 : f32
    %184 = vector.broadcast %cst_68 : f32 to vector<8x128xf32>
    %185 = arith.mulf %184, %156 : vector<8x128xf32>
    %cst_69 = arith.constant 0.24042967 : f32
    %186 = vector.broadcast %cst_69 : f32 to vector<8x128xf32>
    %187 = arith.addf %186, %185 : vector<8x128xf32>
    %cst_70 = arith.constant 0.20755285 : f32
    %188 = vector.broadcast %cst_70 : f32 to vector<8x128xf32>
    %189 = arith.mulf %188, %157 : vector<8x128xf32>
    %190 = arith.addf %187, %189 : vector<8x128xf32>
    %cst_71 = arith.constant 0.293524057 : f32
    %191 = vector.broadcast %cst_71 : f32 to vector<8x128xf32>
    %192 = arith.mulf %191, %156 : vector<8x128xf32>
    %cst_72 = arith.constant -0.893437624 : f32
    %193 = vector.broadcast %cst_72 : f32 to vector<8x128xf32>
    %194 = arith.mulf %193, %157 : vector<8x128xf32>
    %195 = arith.addf %192, %194 : vector<8x128xf32>
    %cst_73 = arith.constant 0.123402819 : f32
    %196 = vector.broadcast %cst_73 : f32 to vector<8x128xf32>
    %197 = arith.mulf %196, %156 : vector<8x128xf32>
    %cst_74 = arith.constant -0.239967212 : f32
    %198 = vector.broadcast %cst_74 : f32 to vector<8x128xf32>
    %199 = arith.addf %198, %197 : vector<8x128xf32>
    %cst_75 = arith.constant -0.653595805 : f32
    %200 = vector.broadcast %cst_75 : f32 to vector<8x128xf32>
    %201 = arith.mulf %200, %157 : vector<8x128xf32>
    %202 = arith.addf %199, %201 : vector<8x128xf32>
    %cst_76 = arith.constant -0.123402819 : f32
    %203 = vector.broadcast %cst_76 : f32 to vector<8x128xf32>
    %204 = arith.mulf %203, %156 : vector<8x128xf32>
    %cst_77 = arith.constant -0.239967212 : f32
    %205 = vector.broadcast %cst_77 : f32 to vector<8x128xf32>
    %206 = arith.addf %205, %204 : vector<8x128xf32>
    %cst_78 = arith.constant 0.653595805 : f32
    %207 = vector.broadcast %cst_78 : f32 to vector<8x128xf32>
    %208 = arith.mulf %207, %157 : vector<8x128xf32>
    %209 = arith.addf %206, %208 : vector<8x128xf32>
    %cst_79 = arith.constant 0.924324035 : f32
    %210 = vector.broadcast %cst_79 : f32 to vector<8x128xf32>
    %211 = arith.mulf %210, %156 : vector<8x128xf32>
    %cst_80 = arith.constant 0.17451793 : f32
    %212 = vector.broadcast %cst_80 : f32 to vector<8x128xf32>
    %213 = arith.mulf %212, %157 : vector<8x128xf32>
    %214 = arith.addf %211, %213 : vector<8x128xf32>
    %215 = arith.mulf %73, %164 : vector<8x128xf32>
    %216 = arith.mulf %80, %183 : vector<8x128xf32>
    %217 = arith.addf %215, %216 : vector<8x128xf32>
    %218 = arith.mulf %86, %202 : vector<8x128xf32>
    %219 = arith.addf %217, %218 : vector<8x128xf32>
    %220 = arith.mulf %73, %171 : vector<8x128xf32>
    %221 = arith.mulf %80, %190 : vector<8x128xf32>
    %222 = arith.addf %220, %221 : vector<8x128xf32>
    %223 = arith.mulf %86, %209 : vector<8x128xf32>
    %224 = arith.addf %222, %223 : vector<8x128xf32>
    %225 = arith.mulf %73, %176 : vector<8x128xf32>
    %226 = arith.mulf %80, %195 : vector<8x128xf32>
    %227 = arith.addf %225, %226 : vector<8x128xf32>
    %228 = arith.mulf %86, %214 : vector<8x128xf32>
    %229 = arith.addf %227, %228 : vector<8x128xf32>
    %230 = arith.mulf %92, %164 : vector<8x128xf32>
    %231 = arith.mulf %99, %183 : vector<8x128xf32>
    %232 = arith.addf %230, %231 : vector<8x128xf32>
    %233 = arith.mulf %105, %202 : vector<8x128xf32>
    %234 = arith.addf %232, %233 : vector<8x128xf32>
    %235 = arith.mulf %92, %171 : vector<8x128xf32>
    %236 = arith.mulf %99, %190 : vector<8x128xf32>
    %237 = arith.addf %235, %236 : vector<8x128xf32>
    %238 = arith.mulf %105, %209 : vector<8x128xf32>
    %239 = arith.addf %237, %238 : vector<8x128xf32>
    %240 = arith.mulf %92, %176 : vector<8x128xf32>
    %241 = arith.mulf %99, %195 : vector<8x128xf32>
    %242 = arith.addf %240, %241 : vector<8x128xf32>
    %243 = arith.mulf %105, %214 : vector<8x128xf32>
    %244 = arith.addf %242, %243 : vector<8x128xf32>
    %245 = arith.mulf %111, %164 : vector<8x128xf32>
    %246 = arith.mulf %118, %183 : vector<8x128xf32>
    %247 = arith.addf %245, %246 : vector<8x128xf32>
    %248 = arith.mulf %124, %202 : vector<8x128xf32>
    %249 = arith.addf %247, %248 : vector<8x128xf32>
    %250 = arith.mulf %111, %171 : vector<8x128xf32>
    %251 = arith.mulf %118, %190 : vector<8x128xf32>
    %252 = arith.addf %250, %251 : vector<8x128xf32>
    %253 = arith.mulf %124, %209 : vector<8x128xf32>
    %254 = arith.addf %252, %253 : vector<8x128xf32>
    %255 = arith.mulf %111, %176 : vector<8x128xf32>
    %256 = arith.mulf %118, %195 : vector<8x128xf32>
    %257 = arith.addf %255, %256 : vector<8x128xf32>
    %258 = arith.mulf %124, %214 : vector<8x128xf32>
    %259 = arith.addf %257, %258 : vector<8x128xf32>
    %cst_81 = arith.constant 0.106178239 : f32
    %260 = vector.broadcast %cst_81 : f32 to vector<8x128xf32>
    %261 = arith.mulf %260, %73 : vector<8x128xf32>
    %cst_82 = arith.constant -0.138983831 : f32
    %262 = vector.broadcast %cst_82 : f32 to vector<8x128xf32>
    %263 = arith.mulf %262, %80 : vector<8x128xf32>
    %264 = arith.addf %261, %263 : vector<8x128xf32>
    %cst_83 = arith.constant 0.180682525 : f32
    %265 = vector.broadcast %cst_83 : f32 to vector<8x128xf32>
    %266 = arith.mulf %265, %86 : vector<8x128xf32>
    %267 = arith.addf %264, %266 : vector<8x128xf32>
    %268 = arith.addf %267, %133 : vector<8x128xf32>
    %cst_84 = arith.constant 0.106178239 : f32
    %269 = vector.broadcast %cst_84 : f32 to vector<8x128xf32>
    %270 = arith.mulf %269, %92 : vector<8x128xf32>
    %cst_85 = arith.constant -0.138983831 : f32
    %271 = vector.broadcast %cst_85 : f32 to vector<8x128xf32>
    %272 = arith.mulf %271, %99 : vector<8x128xf32>
    %273 = arith.addf %270, %272 : vector<8x128xf32>
    %cst_86 = arith.constant 0.180682525 : f32
    %274 = vector.broadcast %cst_86 : f32 to vector<8x128xf32>
    %275 = arith.mulf %274, %105 : vector<8x128xf32>
    %276 = arith.addf %273, %275 : vector<8x128xf32>
    %277 = arith.addf %276, %142 : vector<8x128xf32>
    %cst_87 = arith.constant 0.106178239 : f32
    %278 = vector.broadcast %cst_87 : f32 to vector<8x128xf32>
    %279 = arith.mulf %278, %111 : vector<8x128xf32>
    %cst_88 = arith.constant -0.138983831 : f32
    %280 = vector.broadcast %cst_88 : f32 to vector<8x128xf32>
    %281 = arith.mulf %280, %118 : vector<8x128xf32>
    %282 = arith.addf %279, %281 : vector<8x128xf32>
    %cst_89 = arith.constant 0.180682525 : f32
    %283 = vector.broadcast %cst_89 : f32 to vector<8x128xf32>
    %284 = arith.mulf %283, %124 : vector<8x128xf32>
    %285 = arith.addf %282, %284 : vector<8x128xf32>
    %286 = arith.addf %285, %151 : vector<8x128xf32>
    %c3 = arith.constant 3 : index
    %c0_90 = arith.constant 0 : index
    %c0_91 = arith.constant 0 : index
    %287 = vector.load %arg1[%c3, %c0_90, %c0_91] : memref<6x8x128xf32, #tpu.memory_space<vmem>>, vector<1x8x128xf32>
    %288 = vector.shape_cast %287 : vector<1x8x128xf32> to vector<8x128xf32>
    %289 = math.cos %288 : vector<8x128xf32>
    %290 = math.sin %288 : vector<8x128xf32>
    %cst_92 = arith.constant -0.321986049 : f32
    %291 = vector.broadcast %cst_92 : f32 to vector<8x128xf32>
    %292 = arith.mulf %291, %289 : vector<8x128xf32>
    %cst_93 = arith.constant 0.0888505801 : f32
    %293 = vector.broadcast %cst_93 : f32 to vector<8x128xf32>
    %294 = arith.mulf %293, %290 : vector<8x128xf32>
    %295 = arith.addf %292, %294 : vector<8x128xf32>
    %cst_94 = arith.constant 0.0888505801 : f32
    %296 = vector.broadcast %cst_94 : f32 to vector<8x128xf32>
    %297 = arith.mulf %296, %289 : vector<8x128xf32>
    %cst_95 = arith.constant 0.321986049 : f32
    %298 = vector.broadcast %cst_95 : f32 to vector<8x128xf32>
    %299 = arith.mulf %298, %290 : vector<8x128xf32>
    %300 = arith.addf %297, %299 : vector<8x128xf32>
    %cst_96 = arith.constant 0.825526118 : f32
    %301 = vector.broadcast %cst_96 : f32 to vector<8x128xf32>
    %302 = arith.mulf %301, %289 : vector<8x128xf32>
    %cst_97 = arith.constant -0.461062133 : f32
    %303 = vector.broadcast %cst_97 : f32 to vector<8x128xf32>
    %304 = arith.mulf %303, %290 : vector<8x128xf32>
    %305 = arith.addf %302, %304 : vector<8x128xf32>
    %cst_98 = arith.constant -0.461062133 : f32
    %306 = vector.broadcast %cst_98 : f32 to vector<8x128xf32>
    %307 = arith.mulf %306, %289 : vector<8x128xf32>
    %cst_99 = arith.constant -0.825526118 : f32
    %308 = vector.broadcast %cst_99 : f32 to vector<8x128xf32>
    %309 = arith.mulf %308, %290 : vector<8x128xf32>
    %310 = arith.addf %307, %309 : vector<8x128xf32>
    %cst_100 = arith.constant 0.463499337 : f32
    %311 = vector.broadcast %cst_100 : f32 to vector<8x128xf32>
    %312 = arith.mulf %311, %289 : vector<8x128xf32>
    %cst_101 = arith.constant 0.882908403 : f32
    %313 = vector.broadcast %cst_101 : f32 to vector<8x128xf32>
    %314 = arith.mulf %313, %290 : vector<8x128xf32>
    %315 = arith.addf %312, %314 : vector<8x128xf32>
    %cst_102 = arith.constant 0.882908403 : f32
    %316 = vector.broadcast %cst_102 : f32 to vector<8x128xf32>
    %317 = arith.mulf %316, %289 : vector<8x128xf32>
    %cst_103 = arith.constant -0.463499337 : f32
    %318 = vector.broadcast %cst_103 : f32 to vector<8x128xf32>
    %319 = arith.mulf %318, %290 : vector<8x128xf32>
    %320 = arith.addf %317, %319 : vector<8x128xf32>
    %cst_104 = arith.constant 0.942565917 : f32
    %321 = vector.broadcast %cst_104 : f32 to vector<8x128xf32>
    %322 = arith.mulf %321, %219 : vector<8x128xf32>
    %cst_105 = arith.constant 0.325466394 : f32
    %323 = vector.broadcast %cst_105 : f32 to vector<8x128xf32>
    %324 = arith.mulf %323, %224 : vector<8x128xf32>
    %325 = arith.addf %322, %324 : vector<8x128xf32>
    %cst_106 = arith.constant 0.0751071125 : f32
    %326 = vector.broadcast %cst_106 : f32 to vector<8x128xf32>
    %327 = arith.mulf %326, %229 : vector<8x128xf32>
    %328 = arith.addf %325, %327 : vector<8x128xf32>
    %329 = arith.mulf %219, %295 : vector<8x128xf32>
    %330 = arith.mulf %224, %305 : vector<8x128xf32>
    %331 = arith.addf %329, %330 : vector<8x128xf32>
    %332 = arith.mulf %229, %315 : vector<8x128xf32>
    %333 = arith.addf %331, %332 : vector<8x128xf32>
    %334 = arith.mulf %219, %300 : vector<8x128xf32>
    %335 = arith.mulf %224, %310 : vector<8x128xf32>
    %336 = arith.addf %334, %335 : vector<8x128xf32>
    %337 = arith.mulf %229, %320 : vector<8x128xf32>
    %338 = arith.addf %336, %337 : vector<8x128xf32>
    %cst_107 = arith.constant 0.942565917 : f32
    %339 = vector.broadcast %cst_107 : f32 to vector<8x128xf32>
    %340 = arith.mulf %339, %234 : vector<8x128xf32>
    %cst_108 = arith.constant 0.325466394 : f32
    %341 = vector.broadcast %cst_108 : f32 to vector<8x128xf32>
    %342 = arith.mulf %341, %239 : vector<8x128xf32>
    %343 = arith.addf %340, %342 : vector<8x128xf32>
    %cst_109 = arith.constant 0.0751071125 : f32
    %344 = vector.broadcast %cst_109 : f32 to vector<8x128xf32>
    %345 = arith.mulf %344, %244 : vector<8x128xf32>
    %346 = arith.addf %343, %345 : vector<8x128xf32>
    %347 = arith.mulf %234, %295 : vector<8x128xf32>
    %348 = arith.mulf %239, %305 : vector<8x128xf32>
    %349 = arith.addf %347, %348 : vector<8x128xf32>
    %350 = arith.mulf %244, %315 : vector<8x128xf32>
    %351 = arith.addf %349, %350 : vector<8x128xf32>
    %352 = arith.mulf %234, %300 : vector<8x128xf32>
    %353 = arith.mulf %239, %310 : vector<8x128xf32>
    %354 = arith.addf %352, %353 : vector<8x128xf32>
    %355 = arith.mulf %244, %320 : vector<8x128xf32>
    %356 = arith.addf %354, %355 : vector<8x128xf32>
    %cst_110 = arith.constant 0.942565917 : f32
    %357 = vector.broadcast %cst_110 : f32 to vector<8x128xf32>
    %358 = arith.mulf %357, %249 : vector<8x128xf32>
    %cst_111 = arith.constant 0.325466394 : f32
    %359 = vector.broadcast %cst_111 : f32 to vector<8x128xf32>
    %360 = arith.mulf %359, %254 : vector<8x128xf32>
    %361 = arith.addf %358, %360 : vector<8x128xf32>
    %cst_112 = arith.constant 0.0751071125 : f32
    %362 = vector.broadcast %cst_112 : f32 to vector<8x128xf32>
    %363 = arith.mulf %362, %259 : vector<8x128xf32>
    %364 = arith.addf %361, %363 : vector<8x128xf32>
    %365 = arith.mulf %249, %295 : vector<8x128xf32>
    %366 = arith.mulf %254, %305 : vector<8x128xf32>
    %367 = arith.addf %365, %366 : vector<8x128xf32>
    %368 = arith.mulf %259, %315 : vector<8x128xf32>
    %369 = arith.addf %367, %368 : vector<8x128xf32>
    %370 = arith.mulf %249, %300 : vector<8x128xf32>
    %371 = arith.mulf %254, %310 : vector<8x128xf32>
    %372 = arith.addf %370, %371 : vector<8x128xf32>
    %373 = arith.mulf %259, %320 : vector<8x128xf32>
    %374 = arith.addf %372, %373 : vector<8x128xf32>
    %cst_113 = arith.constant -0.188275814 : f32
    %375 = vector.broadcast %cst_113 : f32 to vector<8x128xf32>
    %376 = arith.mulf %375, %219 : vector<8x128xf32>
    %cst_114 = arith.constant -0.160515785 : f32
    %377 = vector.broadcast %cst_114 : f32 to vector<8x128xf32>
    %378 = arith.mulf %377, %224 : vector<8x128xf32>
    %379 = arith.addf %376, %378 : vector<8x128xf32>
    %cst_115 = arith.constant 0.0212573055 : f32
    %380 = vector.broadcast %cst_115 : f32 to vector<8x128xf32>
    %381 = arith.mulf %380, %229 : vector<8x128xf32>
    %382 = arith.addf %379, %381 : vector<8x128xf32>
    %383 = arith.addf %382, %268 : vector<8x128xf32>
    %cst_116 = arith.constant -0.188275814 : f32
    %384 = vector.broadcast %cst_116 : f32 to vector<8x128xf32>
    %385 = arith.mulf %384, %234 : vector<8x128xf32>
    %cst_117 = arith.constant -0.160515785 : f32
    %386 = vector.broadcast %cst_117 : f32 to vector<8x128xf32>
    %387 = arith.mulf %386, %239 : vector<8x128xf32>
    %388 = arith.addf %385, %387 : vector<8x128xf32>
    %cst_118 = arith.constant 0.0212573055 : f32
    %389 = vector.broadcast %cst_118 : f32 to vector<8x128xf32>
    %390 = arith.mulf %389, %244 : vector<8x128xf32>
    %391 = arith.addf %388, %390 : vector<8x128xf32>
    %392 = arith.addf %391, %277 : vector<8x128xf32>
    %cst_119 = arith.constant -0.188275814 : f32
    %393 = vector.broadcast %cst_119 : f32 to vector<8x128xf32>
    %394 = arith.mulf %393, %249 : vector<8x128xf32>
    %cst_120 = arith.constant -0.160515785 : f32
    %395 = vector.broadcast %cst_120 : f32 to vector<8x128xf32>
    %396 = arith.mulf %395, %254 : vector<8x128xf32>
    %397 = arith.addf %394, %396 : vector<8x128xf32>
    %cst_121 = arith.constant 0.0212573055 : f32
    %398 = vector.broadcast %cst_121 : f32 to vector<8x128xf32>
    %399 = arith.mulf %398, %259 : vector<8x128xf32>
    %400 = arith.addf %397, %399 : vector<8x128xf32>
    %401 = arith.addf %400, %286 : vector<8x128xf32>
    %c4 = arith.constant 4 : index
    %c0_122 = arith.constant 0 : index
    %c0_123 = arith.constant 0 : index
    %402 = vector.load %arg1[%c4, %c0_122, %c0_123] : memref<6x8x128xf32, #tpu.memory_space<vmem>>, vector<1x8x128xf32>
    %403 = vector.shape_cast %402 : vector<1x8x128xf32> to vector<8x128xf32>
    %404 = math.cos %403 : vector<8x128xf32>
    %405 = math.sin %403 : vector<8x128xf32>
    %cst_124 = arith.constant 0.952807247 : f32
    %406 = vector.broadcast %cst_124 : f32 to vector<8x128xf32>
    %407 = arith.mulf %406, %404 : vector<8x128xf32>
    %cst_125 = arith.constant 0.18846117 : f32
    %408 = vector.broadcast %cst_125 : f32 to vector<8x128xf32>
    %409 = arith.mulf %408, %405 : vector<8x128xf32>
    %410 = arith.addf %407, %409 : vector<8x128xf32>
    %cst_126 = arith.constant -0.18846117 : f32
    %411 = vector.broadcast %cst_126 : f32 to vector<8x128xf32>
    %412 = arith.mulf %411, %404 : vector<8x128xf32>
    %cst_127 = arith.constant 0.952807247 : f32
    %413 = vector.broadcast %cst_127 : f32 to vector<8x128xf32>
    %414 = arith.mulf %413, %405 : vector<8x128xf32>
    %415 = arith.addf %412, %414 : vector<8x128xf32>
    %cst_128 = arith.constant -0.139547303 : f32
    %416 = vector.broadcast %cst_128 : f32 to vector<8x128xf32>
    %417 = arith.mulf %416, %404 : vector<8x128xf32>
    %cst_129 = arith.constant -0.424326092 : f32
    %418 = vector.broadcast %cst_129 : f32 to vector<8x128xf32>
    %419 = arith.mulf %418, %405 : vector<8x128xf32>
    %420 = arith.addf %417, %419 : vector<8x128xf32>
    %cst_130 = arith.constant 0.424326092 : f32
    %421 = vector.broadcast %cst_130 : f32 to vector<8x128xf32>
    %422 = arith.mulf %421, %404 : vector<8x128xf32>
    %cst_131 = arith.constant -0.139547303 : f32
    %423 = vector.broadcast %cst_131 : f32 to vector<8x128xf32>
    %424 = arith.mulf %423, %405 : vector<8x128xf32>
    %425 = arith.addf %422, %424 : vector<8x128xf32>
    %cst_132 = arith.constant 0.269601464 : f32
    %426 = vector.broadcast %cst_132 : f32 to vector<8x128xf32>
    %427 = arith.mulf %426, %404 : vector<8x128xf32>
    %cst_133 = arith.constant -0.885680377 : f32
    %428 = vector.broadcast %cst_133 : f32 to vector<8x128xf32>
    %429 = arith.mulf %428, %405 : vector<8x128xf32>
    %430 = arith.addf %427, %429 : vector<8x128xf32>
    %cst_134 = arith.constant 0.885680377 : f32
    %431 = vector.broadcast %cst_134 : f32 to vector<8x128xf32>
    %432 = arith.mulf %431, %404 : vector<8x128xf32>
    %cst_135 = arith.constant 0.269601464 : f32
    %433 = vector.broadcast %cst_135 : f32 to vector<8x128xf32>
    %434 = arith.mulf %433, %405 : vector<8x128xf32>
    %435 = arith.addf %432, %434 : vector<8x128xf32>
    %436 = arith.mulf %328, %410 : vector<8x128xf32>
    %437 = arith.mulf %333, %420 : vector<8x128xf32>
    %438 = arith.addf %436, %437 : vector<8x128xf32>
    %439 = arith.mulf %338, %430 : vector<8x128xf32>
    %440 = arith.addf %438, %439 : vector<8x128xf32>
    %cst_136 = arith.constant 0.237993255 : f32
    %441 = vector.broadcast %cst_136 : f32 to vector<8x128xf32>
    %442 = arith.mulf %441, %328 : vector<8x128xf32>
    %cst_137 = arith.constant 0.894692063 : f32
    %443 = vector.broadcast %cst_137 : f32 to vector<8x128xf32>
    %444 = arith.mulf %443, %333 : vector<8x128xf32>
    %445 = arith.addf %442, %444 : vector<8x128xf32>
    %cst_138 = arith.constant -0.37800172 : f32
    %446 = vector.broadcast %cst_138 : f32 to vector<8x128xf32>
    %447 = arith.mulf %446, %338 : vector<8x128xf32>
    %448 = arith.addf %445, %447 : vector<8x128xf32>
    %449 = arith.mulf %328, %415 : vector<8x128xf32>
    %450 = arith.mulf %333, %425 : vector<8x128xf32>
    %451 = arith.addf %449, %450 : vector<8x128xf32>
    %452 = arith.mulf %338, %435 : vector<8x128xf32>
    %453 = arith.addf %451, %452 : vector<8x128xf32>
    %454 = arith.mulf %346, %410 : vector<8x128xf32>
    %455 = arith.mulf %351, %420 : vector<8x128xf32>
    %456 = arith.addf %454, %455 : vector<8x128xf32>
    %457 = arith.mulf %356, %430 : vector<8x128xf32>
    %458 = arith.addf %456, %457 : vector<8x128xf32>
    %cst_139 = arith.constant 0.237993255 : f32
    %459 = vector.broadcast %cst_139 : f32 to vector<8x128xf32>
    %460 = arith.mulf %459, %346 : vector<8x128xf32>
    %cst_140 = arith.constant 0.894692063 : f32
    %461 = vector.broadcast %cst_140 : f32 to vector<8x128xf32>
    %462 = arith.mulf %461, %351 : vector<8x128xf32>
    %463 = arith.addf %460, %462 : vector<8x128xf32>
    %cst_141 = arith.constant -0.37800172 : f32
    %464 = vector.broadcast %cst_141 : f32 to vector<8x128xf32>
    %465 = arith.mulf %464, %356 : vector<8x128xf32>
    %466 = arith.addf %463, %465 : vector<8x128xf32>
    %467 = arith.mulf %346, %415 : vector<8x128xf32>
    %468 = arith.mulf %351, %425 : vector<8x128xf32>
    %469 = arith.addf %467, %468 : vector<8x128xf32>
    %470 = arith.mulf %356, %435 : vector<8x128xf32>
    %471 = arith.addf %469, %470 : vector<8x128xf32>
    %472 = arith.mulf %364, %410 : vector<8x128xf32>
    %473 = arith.mulf %369, %420 : vector<8x128xf32>
    %474 = arith.addf %472, %473 : vector<8x128xf32>
    %475 = arith.mulf %374, %430 : vector<8x128xf32>
    %476 = arith.addf %474, %475 : vector<8x128xf32>
    %cst_142 = arith.constant 0.237993255 : f32
    %477 = vector.broadcast %cst_142 : f32 to vector<8x128xf32>
    %478 = arith.mulf %477, %364 : vector<8x128xf32>
    %cst_143 = arith.constant 0.894692063 : f32
    %479 = vector.broadcast %cst_143 : f32 to vector<8x128xf32>
    %480 = arith.mulf %479, %369 : vector<8x128xf32>
    %481 = arith.addf %478, %480 : vector<8x128xf32>
    %cst_144 = arith.constant -0.37800172 : f32
    %482 = vector.broadcast %cst_144 : f32 to vector<8x128xf32>
    %483 = arith.mulf %482, %374 : vector<8x128xf32>
    %484 = arith.addf %481, %483 : vector<8x128xf32>
    %485 = arith.mulf %364, %415 : vector<8x128xf32>
    %486 = arith.mulf %369, %425 : vector<8x128xf32>
    %487 = arith.addf %485, %486 : vector<8x128xf32>
    %488 = arith.mulf %374, %435 : vector<8x128xf32>
    %489 = arith.addf %487, %488 : vector<8x128xf32>
    %cst_145 = arith.constant -0.150221154 : f32
    %490 = vector.broadcast %cst_145 : f32 to vector<8x128xf32>
    %491 = arith.mulf %490, %328 : vector<8x128xf32>
    %cst_146 = arith.constant 0.0378248207 : f32
    %492 = vector.broadcast %cst_146 : f32 to vector<8x128xf32>
    %493 = arith.mulf %492, %333 : vector<8x128xf32>
    %494 = arith.addf %491, %493 : vector<8x128xf32>
    %cst_147 = arith.constant 0.183796316 : f32
    %495 = vector.broadcast %cst_147 : f32 to vector<8x128xf32>
    %496 = arith.mulf %495, %338 : vector<8x128xf32>
    %497 = arith.addf %494, %496 : vector<8x128xf32>
    %498 = arith.addf %497, %383 : vector<8x128xf32>
    %cst_148 = arith.constant -0.150221154 : f32
    %499 = vector.broadcast %cst_148 : f32 to vector<8x128xf32>
    %500 = arith.mulf %499, %346 : vector<8x128xf32>
    %cst_149 = arith.constant 0.0378248207 : f32
    %501 = vector.broadcast %cst_149 : f32 to vector<8x128xf32>
    %502 = arith.mulf %501, %351 : vector<8x128xf32>
    %503 = arith.addf %500, %502 : vector<8x128xf32>
    %cst_150 = arith.constant 0.183796316 : f32
    %504 = vector.broadcast %cst_150 : f32 to vector<8x128xf32>
    %505 = arith.mulf %504, %356 : vector<8x128xf32>
    %506 = arith.addf %503, %505 : vector<8x128xf32>
    %507 = arith.addf %506, %392 : vector<8x128xf32>
    %cst_151 = arith.constant -0.150221154 : f32
    %508 = vector.broadcast %cst_151 : f32 to vector<8x128xf32>
    %509 = arith.mulf %508, %364 : vector<8x128xf32>
    %cst_152 = arith.constant 0.0378248207 : f32
    %510 = vector.broadcast %cst_152 : f32 to vector<8x128xf32>
    %511 = arith.mulf %510, %369 : vector<8x128xf32>
    %512 = arith.addf %509, %511 : vector<8x128xf32>
    %cst_153 = arith.constant 0.183796316 : f32
    %513 = vector.broadcast %cst_153 : f32 to vector<8x128xf32>
    %514 = arith.mulf %513, %374 : vector<8x128xf32>
    %515 = arith.addf %512, %514 : vector<8x128xf32>
    %516 = arith.addf %515, %401 : vector<8x128xf32>
    %c5 = arith.constant 5 : index
    %c0_154 = arith.constant 0 : index
    %c0_155 = arith.constant 0 : index
    %517 = vector.load %arg1[%c5, %c0_154, %c0_155] : memref<6x8x128xf32, #tpu.memory_space<vmem>>, vector<1x8x128xf32>
    %518 = vector.shape_cast %517 : vector<1x8x128xf32> to vector<8x128xf32>
    %cst_156 = arith.constant 0.989949464 : f32
    %519 = vector.broadcast %cst_156 : f32 to vector<8x128xf32>
    %520 = arith.mulf %519, %518 : vector<8x128xf32>
    %521 = math.cos %520 : vector<8x128xf32>
    %522 = math.sin %520 : vector<8x128xf32>
    %cst_157 = arith.constant 0.927770316 : f32
    %523 = vector.broadcast %cst_157 : f32 to vector<8x128xf32>
    %524 = arith.mulf %523, %521 : vector<8x128xf32>
    %cst_158 = arith.constant -5.893833E-4 : f32
    %525 = vector.broadcast %cst_158 : f32 to vector<8x128xf32>
    %526 = arith.addf %525, %524 : vector<8x128xf32>
    %cst_159 = arith.constant -0.217720151 : f32
    %527 = vector.broadcast %cst_159 : f32 to vector<8x128xf32>
    %528 = arith.mulf %527, %522 : vector<8x128xf32>
    %529 = arith.addf %526, %528 : vector<8x128xf32>
    %cst_160 = arith.constant -3.737080e-02 : f32
    %530 = vector.broadcast %cst_160 : f32 to vector<8x128xf32>
    %531 = arith.mulf %530, %521 : vector<8x128xf32>
    %cst_161 = arith.constant 9.82305501E-4 : f32
    %532 = vector.broadcast %cst_161 : f32 to vector<8x128xf32>
    %533 = arith.addf %532, %531 : vector<8x128xf32>
    %cst_162 = arith.constant -0.862263619 : f32
    %534 = vector.broadcast %cst_162 : f32 to vector<8x128xf32>
    %535 = arith.mulf %534, %522 : vector<8x128xf32>
    %536 = arith.addf %533, %535 : vector<8x128xf32>
    %cst_163 = arith.constant -0.371270627 : f32
    %537 = vector.broadcast %cst_163 : f32 to vector<8x128xf32>
    %538 = arith.mulf %537, %521 : vector<8x128xf32>
    %cst_164 = arith.constant -0.00157168868 : f32
    %539 = vector.broadcast %cst_164 : f32 to vector<8x128xf32>
    %540 = arith.addf %539, %538 : vector<8x128xf32>
    %cst_165 = arith.constant -0.457269728 : f32
    %541 = vector.broadcast %cst_165 : f32 to vector<8x128xf32>
    %542 = arith.mulf %541, %522 : vector<8x128xf32>
    %543 = arith.addf %540, %542 : vector<8x128xf32>
    %cst_166 = arith.constant 0.166965455 : f32
    %544 = vector.broadcast %cst_166 : f32 to vector<8x128xf32>
    %545 = arith.mulf %544, %521 : vector<8x128xf32>
    %cst_167 = arith.constant -0.192568615 : f32
    %546 = vector.broadcast %cst_167 : f32 to vector<8x128xf32>
    %547 = arith.addf %546, %545 : vector<8x128xf32>
    %cst_168 = arith.constant 0.716644526 : f32
    %548 = vector.broadcast %cst_168 : f32 to vector<8x128xf32>
    %549 = arith.mulf %548, %522 : vector<8x128xf32>
    %550 = arith.addf %547, %549 : vector<8x128xf32>
    %cst_169 = arith.constant 0.665840804 : f32
    %551 = vector.broadcast %cst_169 : f32 to vector<8x128xf32>
    %552 = arith.mulf %551, %521 : vector<8x128xf32>
    %cst_170 = arith.constant 0.320947677 : f32
    %553 = vector.broadcast %cst_170 : f32 to vector<8x128xf32>
    %554 = arith.addf %553, %552 : vector<8x128xf32>
    %cst_171 = arith.constant -0.0277901329 : f32
    %555 = vector.broadcast %cst_171 : f32 to vector<8x128xf32>
    %556 = arith.mulf %555, %522 : vector<8x128xf32>
    %557 = arith.addf %554, %556 : vector<8x128xf32>
    %cst_172 = arith.constant 0.353538454 : f32
    %558 = vector.broadcast %cst_172 : f32 to vector<8x128xf32>
    %559 = arith.mulf %558, %521 : vector<8x128xf32>
    %cst_173 = arith.constant -0.513516307 : f32
    %560 = vector.broadcast %cst_173 : f32 to vector<8x128xf32>
    %561 = arith.addf %560, %559 : vector<8x128xf32>
    %cst_174 = arith.constant -0.28611052 : f32
    %562 = vector.broadcast %cst_174 : f32 to vector<8x128xf32>
    %563 = arith.mulf %562, %522 : vector<8x128xf32>
    %564 = arith.addf %561, %563 : vector<8x128xf32>
    %cst_175 = arith.constant 0.139742747 : f32
    %565 = vector.broadcast %cst_175 : f32 to vector<8x128xf32>
    %566 = arith.mulf %565, %521 : vector<8x128xf32>
    %cst_176 = arith.constant 0.233995125 : f32
    %567 = vector.broadcast %cst_176 : f32 to vector<8x128xf32>
    %568 = arith.addf %567, %566 : vector<8x128xf32>
    %cst_177 = arith.constant 0.589221358 : f32
    %569 = vector.broadcast %cst_177 : f32 to vector<8x128xf32>
    %570 = arith.mulf %569, %522 : vector<8x128xf32>
    %571 = arith.addf %568, %570 : vector<8x128xf32>
    %cst_178 = arith.constant 0.547866225 : f32
    %572 = vector.broadcast %cst_178 : f32 to vector<8x128xf32>
    %573 = arith.mulf %572, %521 : vector<8x128xf32>
    %cst_179 = arith.constant -0.389991879 : f32
    %574 = vector.broadcast %cst_179 : f32 to vector<8x128xf32>
    %575 = arith.addf %574, %573 : vector<8x128xf32>
    %cst_180 = arith.constant -0.0250420254 : f32
    %576 = vector.broadcast %cst_180 : f32 to vector<8x128xf32>
    %577 = arith.mulf %576, %522 : vector<8x128xf32>
    %578 = arith.addf %575, %577 : vector<8x128xf32>
    %cst_181 = arith.constant 0.290012866 : f32
    %579 = vector.broadcast %cst_181 : f32 to vector<8x128xf32>
    %580 = arith.mulf %579, %521 : vector<8x128xf32>
    %cst_182 = arith.constant 6.239870e-01 : f32
    %581 = vector.broadcast %cst_182 : f32 to vector<8x128xf32>
    %582 = arith.addf %581, %580 : vector<8x128xf32>
    %cst_183 = arith.constant -0.23660928 : f32
    %583 = vector.broadcast %cst_183 : f32 to vector<8x128xf32>
    %584 = arith.mulf %583, %522 : vector<8x128xf32>
    %585 = arith.addf %582, %584 : vector<8x128xf32>
    %586 = arith.mulf %440, %529 : vector<8x128xf32>
    %587 = arith.mulf %448, %550 : vector<8x128xf32>
    %588 = arith.addf %586, %587 : vector<8x128xf32>
    %589 = arith.mulf %453, %571 : vector<8x128xf32>
    %590 = arith.addf %588, %589 : vector<8x128xf32>
    %591 = arith.mulf %440, %536 : vector<8x128xf32>
    %592 = arith.mulf %448, %557 : vector<8x128xf32>
    %593 = arith.addf %591, %592 : vector<8x128xf32>
    %594 = arith.mulf %453, %578 : vector<8x128xf32>
    %595 = arith.addf %593, %594 : vector<8x128xf32>
    %596 = arith.mulf %440, %543 : vector<8x128xf32>
    %597 = arith.mulf %448, %564 : vector<8x128xf32>
    %598 = arith.addf %596, %597 : vector<8x128xf32>
    %599 = arith.mulf %453, %585 : vector<8x128xf32>
    %600 = arith.addf %598, %599 : vector<8x128xf32>
    %601 = arith.mulf %458, %529 : vector<8x128xf32>
    %602 = arith.mulf %466, %550 : vector<8x128xf32>
    %603 = arith.addf %601, %602 : vector<8x128xf32>
    %604 = arith.mulf %471, %571 : vector<8x128xf32>
    %605 = arith.addf %603, %604 : vector<8x128xf32>
    %606 = arith.mulf %458, %536 : vector<8x128xf32>
    %607 = arith.mulf %466, %557 : vector<8x128xf32>
    %608 = arith.addf %606, %607 : vector<8x128xf32>
    %609 = arith.mulf %471, %578 : vector<8x128xf32>
    %610 = arith.addf %608, %609 : vector<8x128xf32>
    %611 = arith.mulf %458, %543 : vector<8x128xf32>
    %612 = arith.mulf %466, %564 : vector<8x128xf32>
    %613 = arith.addf %611, %612 : vector<8x128xf32>
    %614 = arith.mulf %471, %585 : vector<8x128xf32>
    %615 = arith.addf %613, %614 : vector<8x128xf32>
    %616 = arith.mulf %476, %529 : vector<8x128xf32>
    %617 = arith.mulf %484, %550 : vector<8x128xf32>
    %618 = arith.addf %616, %617 : vector<8x128xf32>
    %619 = arith.mulf %489, %571 : vector<8x128xf32>
    %620 = arith.addf %618, %619 : vector<8x128xf32>
    %621 = arith.mulf %476, %536 : vector<8x128xf32>
    %622 = arith.mulf %484, %557 : vector<8x128xf32>
    %623 = arith.addf %621, %622 : vector<8x128xf32>
    %624 = arith.mulf %489, %578 : vector<8x128xf32>
    %625 = arith.addf %623, %624 : vector<8x128xf32>
    %626 = arith.mulf %476, %543 : vector<8x128xf32>
    %627 = arith.mulf %484, %564 : vector<8x128xf32>
    %628 = arith.addf %626, %627 : vector<8x128xf32>
    %629 = arith.mulf %489, %585 : vector<8x128xf32>
    %630 = arith.addf %628, %629 : vector<8x128xf32>
    %cst_184 = arith.constant 0.0772908702 : f32
    %631 = vector.broadcast %cst_184 : f32 to vector<8x128xf32>
    %632 = arith.mulf %631, %440 : vector<8x128xf32>
    %cst_185 = arith.constant 0.0896383747 : f32
    %633 = vector.broadcast %cst_185 : f32 to vector<8x128xf32>
    %634 = arith.mulf %633, %448 : vector<8x128xf32>
    %635 = arith.addf %632, %634 : vector<8x128xf32>
    %cst_186 = arith.constant -0.0727342591 : f32
    %636 = vector.broadcast %cst_186 : f32 to vector<8x128xf32>
    %637 = arith.mulf %636, %453 : vector<8x128xf32>
    %638 = arith.addf %635, %637 : vector<8x128xf32>
    %639 = arith.addf %638, %498 : vector<8x128xf32>
    %cst_187 = arith.constant 0.0772908702 : f32
    %640 = vector.broadcast %cst_187 : f32 to vector<8x128xf32>
    %641 = arith.mulf %640, %458 : vector<8x128xf32>
    %cst_188 = arith.constant 0.0896383747 : f32
    %642 = vector.broadcast %cst_188 : f32 to vector<8x128xf32>
    %643 = arith.mulf %642, %466 : vector<8x128xf32>
    %644 = arith.addf %641, %643 : vector<8x128xf32>
    %cst_189 = arith.constant -0.0727342591 : f32
    %645 = vector.broadcast %cst_189 : f32 to vector<8x128xf32>
    %646 = arith.mulf %645, %471 : vector<8x128xf32>
    %647 = arith.addf %644, %646 : vector<8x128xf32>
    %648 = arith.addf %647, %507 : vector<8x128xf32>
    %cst_190 = arith.constant 0.0772908702 : f32
    %649 = vector.broadcast %cst_190 : f32 to vector<8x128xf32>
    %650 = arith.mulf %649, %476 : vector<8x128xf32>
    %cst_191 = arith.constant 0.0896383747 : f32
    %651 = vector.broadcast %cst_191 : f32 to vector<8x128xf32>
    %652 = arith.mulf %651, %484 : vector<8x128xf32>
    %653 = arith.addf %650, %652 : vector<8x128xf32>
    %cst_192 = arith.constant -0.0727342591 : f32
    %654 = vector.broadcast %cst_192 : f32 to vector<8x128xf32>
    %655 = arith.mulf %654, %489 : vector<8x128xf32>
    %656 = arith.addf %653, %655 : vector<8x128xf32>
    %657 = arith.addf %656, %516 : vector<8x128xf32>
    %cst_193 = arith.constant 0.153946787 : f32
    %658 = vector.broadcast %cst_193 : f32 to vector<8x128xf32>
    %659 = arith.mulf %658, %590 : vector<8x128xf32>
    %cst_194 = arith.constant -0.0171634685 : f32
    %660 = vector.broadcast %cst_194 : f32 to vector<8x128xf32>
    %661 = arith.mulf %660, %595 : vector<8x128xf32>
    %662 = arith.addf %659, %661 : vector<8x128xf32>
    %cst_195 = arith.constant -0.126660496 : f32
    %663 = vector.broadcast %cst_195 : f32 to vector<8x128xf32>
    %664 = arith.mulf %663, %600 : vector<8x128xf32>
    %665 = arith.addf %662, %664 : vector<8x128xf32>
    %666 = arith.addf %665, %639 : vector<8x128xf32>
    %cst_196 = arith.constant 0.153946787 : f32
    %667 = vector.broadcast %cst_196 : f32 to vector<8x128xf32>
    %668 = arith.mulf %667, %605 : vector<8x128xf32>
    %cst_197 = arith.constant -0.0171634685 : f32
    %669 = vector.broadcast %cst_197 : f32 to vector<8x128xf32>
    %670 = arith.mulf %669, %610 : vector<8x128xf32>
    %671 = arith.addf %668, %670 : vector<8x128xf32>
    %cst_198 = arith.constant -0.126660496 : f32
    %672 = vector.broadcast %cst_198 : f32 to vector<8x128xf32>
    %673 = arith.mulf %672, %615 : vector<8x128xf32>
    %674 = arith.addf %671, %673 : vector<8x128xf32>
    %675 = arith.addf %674, %648 : vector<8x128xf32>
    %cst_199 = arith.constant 0.153946787 : f32
    %676 = vector.broadcast %cst_199 : f32 to vector<8x128xf32>
    %677 = arith.mulf %676, %620 : vector<8x128xf32>
    %cst_200 = arith.constant -0.0171634685 : f32
    %678 = vector.broadcast %cst_200 : f32 to vector<8x128xf32>
    %679 = arith.mulf %678, %625 : vector<8x128xf32>
    %680 = arith.addf %677, %679 : vector<8x128xf32>
    %cst_201 = arith.constant -0.126660496 : f32
    %681 = vector.broadcast %cst_201 : f32 to vector<8x128xf32>
    %682 = arith.mulf %681, %630 : vector<8x128xf32>
    %683 = arith.addf %680, %682 : vector<8x128xf32>
    %684 = arith.addf %683, %657 : vector<8x128xf32>
    %c0_202 = arith.constant 0 : index
    %c0_203 = arith.constant 0 : index
    %c0_204 = arith.constant 0 : index
    %685 = vector.load %arg2[%c0_202, %c0_203, %c0_204] : memref<12x8x128xf32, #tpu.memory_space<vmem>>, vector<1x8x128xf32>
    %686 = vector.shape_cast %685 : vector<1x8x128xf32> to vector<8x128xf32>
    %687 = vector.shape_cast %590 : vector<8x128xf32> to vector<1x8x128xf32>
    tpu.vector_store %arg2[%c0_202, %c0_203, %c0_204], %687 {strides = array<i32>} : memref<12x8x128xf32, #tpu.memory_space<vmem>>, vector<1x8x128xf32>,
    %c1_205 = arith.constant 1 : index
    %c0_206 = arith.constant 0 : index
    %c0_207 = arith.constant 0 : index
    %688 = vector.load %arg2[%c1_205, %c0_206, %c0_207] : memref<12x8x128xf32, #tpu.memory_space<vmem>>, vector<1x8x128xf32>
    %689 = vector.shape_cast %688 : vector<1x8x128xf32> to vector<8x128xf32>
    %690 = vector.shape_cast %595 : vector<8x128xf32> to vector<1x8x128xf32>
    tpu.vector_store %arg2[%c1_205, %c0_206, %c0_207], %690 {strides = array<i32>} : memref<12x8x128xf32, #tpu.memory_space<vmem>>, vector<1x8x128xf32>,
    %c2_208 = arith.constant 2 : index
    %c0_209 = arith.constant 0 : index
    %c0_210 = arith.constant 0 : index
    %691 = vector.load %arg2[%c2_208, %c0_209, %c0_210] : memref<12x8x128xf32, #tpu.memory_space<vmem>>, vector<1x8x128xf32>
    %692 = vector.shape_cast %691 : vector<1x8x128xf32> to vector<8x128xf32>
    %693 = vector.shape_cast %600 : vector<8x128xf32> to vector<1x8x128xf32>
    tpu.vector_store %arg2[%c2_208, %c0_209, %c0_210], %693 {strides = array<i32>} : memref<12x8x128xf32, #tpu.memory_space<vmem>>, vector<1x8x128xf32>,
    %c3_211 = arith.constant 3 : index
    %c0_212 = arith.constant 0 : index
    %c0_213 = arith.constant 0 : index
    %694 = vector.load %arg2[%c3_211, %c0_212, %c0_213] : memref<12x8x128xf32, #tpu.memory_space<vmem>>, vector<1x8x128xf32>
    %695 = vector.shape_cast %694 : vector<1x8x128xf32> to vector<8x128xf32>
    %696 = vector.shape_cast %666 : vector<8x128xf32> to vector<1x8x128xf32>
    tpu.vector_store %arg2[%c3_211, %c0_212, %c0_213], %696 {strides = array<i32>} : memref<12x8x128xf32, #tpu.memory_space<vmem>>, vector<1x8x128xf32>,
    %c4_214 = arith.constant 4 : index
    %c0_215 = arith.constant 0 : index
    %c0_216 = arith.constant 0 : index
    %697 = vector.load %arg2[%c4_214, %c0_215, %c0_216] : memref<12x8x128xf32, #tpu.memory_space<vmem>>, vector<1x8x128xf32>
    %698 = vector.shape_cast %697 : vector<1x8x128xf32> to vector<8x128xf32>
    %699 = vector.shape_cast %605 : vector<8x128xf32> to vector<1x8x128xf32>
    tpu.vector_store %arg2[%c4_214, %c0_215, %c0_216], %699 {strides = array<i32>} : memref<12x8x128xf32, #tpu.memory_space<vmem>>, vector<1x8x128xf32>,
    %c5_217 = arith.constant 5 : index
    %c0_218 = arith.constant 0 : index
    %c0_219 = arith.constant 0 : index
    %700 = vector.load %arg2[%c5_217, %c0_218, %c0_219] : memref<12x8x128xf32, #tpu.memory_space<vmem>>, vector<1x8x128xf32>
    %701 = vector.shape_cast %700 : vector<1x8x128xf32> to vector<8x128xf32>
    %702 = vector.shape_cast %610 : vector<8x128xf32> to vector<1x8x128xf32>
    tpu.vector_store %arg2[%c5_217, %c0_218, %c0_219], %702 {strides = array<i32>} : memref<12x8x128xf32, #tpu.memory_space<vmem>>, vector<1x8x128xf32>,
    %c6 = arith.constant 6 : index
    %c0_220 = arith.constant 0 : index
    %c0_221 = arith.constant 0 : index
    %703 = vector.load %arg2[%c6, %c0_220, %c0_221] : memref<12x8x128xf32, #tpu.memory_space<vmem>>, vector<1x8x128xf32>
    %704 = vector.shape_cast %703 : vector<1x8x128xf32> to vector<8x128xf32>
    %705 = vector.shape_cast %615 : vector<8x128xf32> to vector<1x8x128xf32>
    tpu.vector_store %arg2[%c6, %c0_220, %c0_221], %705 {strides = array<i32>} : memref<12x8x128xf32, #tpu.memory_space<vmem>>, vector<1x8x128xf32>,
    %c7 = arith.constant 7 : index
    %c0_222 = arith.constant 0 : index
    %c0_223 = arith.constant 0 : index
    %706 = vector.load %arg2[%c7, %c0_222, %c0_223] : memref<12x8x128xf32, #tpu.memory_space<vmem>>, vector<1x8x128xf32>
    %707 = vector.shape_cast %706 : vector<1x8x128xf32> to vector<8x128xf32>
    %708 = vector.shape_cast %675 : vector<8x128xf32> to vector<1x8x128xf32>
    tpu.vector_store %arg2[%c7, %c0_222, %c0_223], %708 {strides = array<i32>} : memref<12x8x128xf32, #tpu.memory_space<vmem>>, vector<1x8x128xf32>,
    %c8 = arith.constant 8 : index
    %c0_224 = arith.constant 0 : index
    %c0_225 = arith.constant 0 : index
    %709 = vector.load %arg2[%c8, %c0_224, %c0_225] : memref<12x8x128xf32, #tpu.memory_space<vmem>>, vector<1x8x128xf32>
    %710 = vector.shape_cast %709 : vector<1x8x128xf32> to vector<8x128xf32>
    %711 = vector.shape_cast %620 : vector<8x128xf32> to vector<1x8x128xf32>
    tpu.vector_store %arg2[%c8, %c0_224, %c0_225], %711 {strides = array<i32>} : memref<12x8x128xf32, #tpu.memory_space<vmem>>, vector<1x8x128xf32>,
    %c9 = arith.constant 9 : index
    %c0_226 = arith.constant 0 : index
    %c0_227 = arith.constant 0 : index
    %712 = vector.load %arg2[%c9, %c0_226, %c0_227] : memref<12x8x128xf32, #tpu.memory_space<vmem>>, vector<1x8x128xf32>
    %713 = vector.shape_cast %712 : vector<1x8x128xf32> to vector<8x128xf32>
    %714 = vector.shape_cast %625 : vector<8x128xf32> to vector<1x8x128xf32>
    tpu.vector_store %arg2[%c9, %c0_226, %c0_227], %714 {strides = array<i32>} : memref<12x8x128xf32, #tpu.memory_space<vmem>>, vector<1x8x128xf32>,
    %c10 = arith.constant 10 : index
    %c0_228 = arith.constant 0 : index
    %c0_229 = arith.constant 0 : index
    %715 = vector.load %arg2[%c10, %c0_228, %c0_229] : memref<12x8x128xf32, #tpu.memory_space<vmem>>, vector<1x8x128xf32>
    %716 = vector.shape_cast %715 : vector<1x8x128xf32> to vector<8x128xf32>
    %717 = vector.shape_cast %630 : vector<8x128xf32> to vector<1x8x128xf32>
    tpu.vector_store %arg2[%c10, %c0_228, %c0_229], %717 {strides = array<i32>} : memref<12x8x128xf32, #tpu.memory_space<vmem>>, vector<1x8x128xf32>,
    %c11 = arith.constant 11 : index
    %c0_230 = arith.constant 0 : index
    %c0_231 = arith.constant 0 : index
    %718 = vector.load %arg2[%c11, %c0_230, %c0_231] : memref<12x8x128xf32, #tpu.memory_space<vmem>>, vector<1x8x128xf32>
    %719 = vector.shape_cast %718 : vector<1x8x128xf32> to vector<8x128xf32>
    %720 = vector.shape_cast %684 : vector<8x128xf32> to vector<1x8x128xf32>
    tpu.vector_store %arg2[%c11, %c0_230, %c0_231], %720 {strides = array<i32>} : memref<12x8x128xf32, #tpu.memory_space<vmem>>, vector<1x8x128xf32>,
    return
  }
  func.func @transform_0(%arg0: i32) -> (i32, i32, i32) {
    %c0_i32 = arith.constant 0 : i32
    %c0_i32_0 = arith.constant 0 : i32
    %c0_i32_1 = arith.constant 0 : i32
    return %c0_i32, %arg0, %c0_i32_0 : i32, i32, i32
  }
  func.func @transform_1(%arg0: i32) -> (i32, i32, i32) {
    %c0_i32 = arith.constant 0 : i32
    %c0_i32_0 = arith.constant 0 : i32
    %c0_i32_1 = arith.constant 0 : i32
    return %c0_i32, %arg0, %c0_i32_0 : i32, i32, i32
  }
}

</mosaic_0001>

<bundles_post_ra>
// kernel: tpu_custom_call.1
= control target key start
LH: loop header
LB: loop body
LE: loop exit
PB: predicated region body
PF: predicated region fallthrough
CT: control target
= control target key end

     0   :  { %6 = vsyncpa [#allocation3], 0  ;;  %s2998_s0 = inlined_call_operand.hbm [shape: f32[6,8,128], index: 0, kind: input, shape index: {}]   ;;  %s2999_s1 = inlined_call_operand.hbm [shape: f32[12,8,128], index: 1, kind: output, shape index: {}]  }
   0x1   :  { %7 = vsyncpa [#allocation4], 0  ;;  %s1942_s6 = smov [#allocation2]   ;;  %s1894_s10 = scalar_lea.hbm %s2998_s0, 768 }
   0x2   :  { %s13_s7 = sshll.u32 %s1942_s6, 4  ;;  %p1895_p0 = scmp.ne.s32.totalorder %s2998_s0, %s1894_s10  ;;  %s14_s7 = int_to_ptr.vmem [resolvable:$true] %s13_s7 }
   0x3   :  { %p1898_p1 = scmp.lt.u32.totalorder %s1894_s10, %s2998_s0 }
   0x5   :  { %p1900_p2 = pnand %p1898_p1, %p1895_p0 }
   0x7   :  { %1903 = shalt.err (!%p1900_p2)
}
   0x8   :  { %s1904_s15 = scalar_lea.vmem %s14_s7, 768  ;;  %p1909_p4 = scmp.lt.s32.totalorder %s14_s7, %s14_s7 }
   0x9   :  { %p1905_p3 = scmp.ne.s32.totalorder %s14_s7, %s1904_s15  ;;  %p1910_p5 = scmp.lt.s32.totalorder %s1904_s15, %s1904_s15 }
   0xb   :  { %p1911_p6 = por %p1910_p5, %p1909_p4 }
   0xd   :  { %p1912_p7 = pnand %p1911_p6, %p1905_p3 }
   0xf   :  { %1915 = shalt.err (!%p1912_p7)
}
  0x10   :  { %s1943_s16 = smov 128   ;;  %s1944_s17 = smov 8  }
  0x11   :  { %19 = dma.hbm_to_vmem [thread:$0]  %s2998_s0, 768, %s14_s7, [#allocation3], %s1943_s16, %s1943_s16, %s1944_s17  }
  0x12   :  { %1938 = dma.done.wait [#allocation3], 768  }
  0x13   :  { %1939 = vsyncadd [#allocation3], 4294966528  ;;  %v1977_v0 = vld [vmem:[#allocation2] sm:$0xff]  ;;  %v1979_v1 = vld [vmem:[#allocation2 + $0x8] sm:$0xff]  ;;  %v3003_v29 = vmov 683565275  }
  0x14   :  { %v24_v2 = vand.u32 2147483647, %v1977_v0  ;;  %v27_v3 = vand.u32 2139095040, %v1977_v0  ;;  %v251_v4 = vand.u32 2147483647, %v1979_v1  ;;  %v254_v5 = vand.u32 2139095040, %v1979_v1 }
  0x15   :  { %v534_v6 = vld [vmem:[#allocation2 + $0x10] sm:$0xff]  ;;  %v1946_v31 = vmov 2475754826   ;;  %v1947_v33 = vmov 2131351028   ;;  %s1951_s0 = smov [#allocation5]  }
  0x16   :  { %v28_v7 = vshrl.u32 %v27_v3, 23  ;;  %v31_v8 = vand.u32 8388607, %v24_v2  ;;  %v255_v9 = vshrl.u32 %v254_v5, 23  ;;  %v258_v10 = vand.u32 8388607, %v251_v4 }
  0x17   :  { %v1989_v12 = vmul.f32 1.4142135, %v534_v6  ;;  %v1948_v35 = vmov 2102212464   ;;  %v1949_v37 = vmov 920167782  }
  0x18   :  { %v1786_v11 = vadd.s32 4294967169, %v28_v7  ;;  %v1794_v13 = vadd.s32 4294967169, %v255_v9  ;;  %v32_v15 = vor.u32 8388608, %v31_v8  ;;  %v259_v16 = vor.u32 8388608, %v258_v10  ;;  %s1774_s20 = sshll.u32 %s1951_s0, 4  ;;  %s1775_s20 = int_to_ptr.vmem [resolvable:$true] %s1774_s20 }
  0x19   :  { %v539_v18 = vand.u32 2139095040, %v1989_v12  ;;  %v3001_v45 = vmov 1326507024   ;;  %s1916_s21 = scalar_lea.vmem %s1775_s20, 1536  ;;  %p1921_p9 = scmp.lt.s32.totalorder %s1775_s20, %s1775_s20 }
  0x1a   :  { %v34_v14 = vadd.s32 1, %v1786_v11  ;;  %v261_v17 = vadd.s32 1, %v1794_v13  ;;  %v1992_v24 = vshll.u32 %v32_v15, 8  ;;  %v1996_v27 = vshll.u32 %v259_v16, 8  ;;  %p1917_p8 = scmp.ne.s32.totalorder %s1775_s20, %s1916_s21  ;;  %p1922_p10 = scmp.lt.s32.totalorder %s1916_s21, %s1916_s21 }
  0x1b   :  { %v540_v20 = vshrl.u32 %v539_v18, 23 }
  0x1c   :  { %vm35_vm0 = vcmp.gt.s32.totalorder %v34_v14, 0  ;;  %vm262_vm1 = vcmp.gt.s32.totalorder %v261_v17, 0  ;;  %p1923_p11 = por %p1922_p10, %p1921_p9 }
  0x1d   :  { %v36_v19 = vsel %vm35_vm0, %v34_v14, 0  ;;  %v263_v23 = vsel %vm262_vm1, %v261_v17, 0  ;;  %v2003_v39 = vadd.s32 4294967169, %v540_v20 }
  0x1e   :  { %v37_v21 = vshrl.u32 %v36_v19, 5  ;;  %v38_v22 = vand.u32 31, %v36_v19  ;;  %v1994_v25 = vshrl.u32 %v263_v23, 5  ;;  %v265_v26 = vand.u32 31, %v263_v23  ;;  %p1924_p12 = pnand %p1923_p11, %p1917_p8 }
  0x20   :  { %v39_v28 = vsub.s32 32, %v38_v22  ;;  %v41_v30 = vshll.u32 %v3003_v29, %v38_v22  ;;  %v44_v32 = vshll.u32 %v1946_v31, %v38_v22  ;;  %v47_v34 = vshll.u32 %v1947_v33, %v38_v22 }
  0x21   :  { %v50_v36 = vshll.u32 %v1948_v35, %v38_v22  ;;  %v53_v38 = vshll.u32 %v1949_v37, %v38_v22  ;;  %vm56_vm2 = vcmp.lt.s32.totalorder %v37_v21, 1  ;;  %vm57_vm3 = vcmp.lt.s32.totalorder %v37_v21, 2 }
  0x22   :  { %v40_v40 = vshrl.u32 %v3003_v29, %v39_v28  ;;  %v42_v41 = vshrl.u32 %v1946_v31, %v39_v28  ;;  %v45_v42 = vshrl.u32 %v1947_v33, %v39_v28  ;;  %v48_v43 = vshrl.u32 %v1948_v35, %v39_v28 }
  0x23   :  { %v51_v44 = vshrl.u32 %v1949_v37, %v39_v28  ;;  %v54_v46 = vshrl.u32 %v3001_v45, %v39_v28  ;;  %vm59_vm4 = vcmp.lt.s32.totalorder %v37_v21, 4  ;;  %v266_v50 = vsub.s32 32, %v265_v26 }
  0x24   :  { %v43_v47 = vor.u32 %v42_v41, %v41_v30  ;;  %v46_v48 = vor.u32 %v45_v42, %v44_v32  ;;  %v49_v49 = vor.u32 %v48_v43, %v47_v34  ;;  %vm58_vm5 = vcmp.lt.s32.totalorder %v37_v21, 3 }
  0x25   :  { %v52_v51 = vor.u32 %v51_v44, %v50_v36  ;;  %v55_v52 = vor.u32 %v54_v46, %v53_v38  ;;  %v268_v53 = vshll.u32 %v3003_v29, %v265_v26  ;;  %v271_v61 = vshll.u32 %v1946_v31, %v265_v26 }
  0x26   :  { %v60_v54 = vsel %vm56_vm2, %v40_v40, %v43_v47  ;;  %v61_v55 = vsel %vm59_vm4, %v49_v49, 2102212464  ;;  %v64_v56 = vsel %vm56_vm2, %v43_v47, %v46_v48  ;;  %v68_v57 = vsel %vm56_vm2, %v46_v48, %v49_v49 }
  0x27   :  { %v62_v58 = vsel %vm58_vm5, %v46_v48, %v61_v55  ;;  %v65_v59 = vsel %vm59_vm4, %v52_v51, 920167782  ;;  %v69_v60 = vsel %vm59_vm4, %v55_v52, 1326507024  ;;  %v267_v3 = vshrl.u32 %v3003_v29, %v266_v50 }
  0x28   :  { %v66_v62 = vsel %vm58_vm5, %v49_v49, %v65_v59  ;;  %v70_v63 = vsel %vm58_vm5, %v52_v51, %v69_v60  ;;  %v269_v5 = vshrl.u32 %v1946_v31, %v266_v50  ;;  %v63_v6 = vsel %vm57_vm3, %v60_v54, %v62_v58 }
  0x29   :  { %v67_v7 = vsel %vm57_vm3, %v64_v56, %v66_v62  ;;  %v71_v8 = vsel %vm57_vm3, %v68_v57, %v70_v63  ;;  %v272_v9 = vshrl.u32 %v1947_v33, %v266_v50  ;;  %v274_v17 = vshll.u32 %v1947_v33, %v265_v26 }
  0x2a   :  { %v2023_v10 = vmul.u32.u64.low %v1992_v24, %v71_v8  ;;  %v2024_v11 = vmul.u32.u64.high %v1992_v24, %v71_v8, %v2023_v10  ;;  %v2027_v13 = vmul.u32.u64.low %v1992_v24, %v67_v7  ;;  %v2028_v14 = vmul.u32.u64.high %v1992_v24, %v67_v7, %v2027_v13 }
  0x2b   :  { %v270_v15 = vor.u32 %v269_v5, %v268_v53  ;;  %v273_v16 = vor.u32 %v272_v9, %v271_v61  ;;  %v275_v18 = vshrl.u32 %v1948_v35, %v266_v50  ;;  %v277_v19 = vshll.u32 %v1948_v35, %v265_v26 }
  0x2c   :  { %v278_v20 = vshrl.u32 %v1949_v37, %v266_v50  ;;  %v280_v21 = vshll.u32 %v1949_v37, %v265_v26  ;;  %v281_v22 = vshrl.u32 %v3001_v45, %v266_v50  ;;  %v79_v23 = vmul.u32 %v1992_v24, %v63_v6 }
  0x2d   :  { %v276_v28 = vor.u32 %v275_v18, %v274_v17  ;;  %vm283_vm6 = vcmp.lt.s32.totalorder %v1994_v25, 1  ;;  %vm284_vm7 = vcmp.lt.s32.totalorder %v1994_v25, 2  ;;  %vm81_vm8 = vc.u32 %v2024_v11, %v2027_v13 }
  0x2e   :  { %v82_v30 = vadd.s32 1, %v2028_v14  ;;  %v279_v32 = vor.u32 %v278_v20, %v277_v19  ;;  %vm285_vm9 = vcmp.lt.s32.totalorder %v1994_v25, 3  ;;  %v282_v34 = vor.u32 %v281_v22, %v280_v21 }
  0x2f   :  { %vm286_vm10 = vcmp.lt.s32.totalorder %v1994_v25, 4  ;;  %v287_v26 = vsel %vm283_vm6, %v267_v3, %v270_v15  ;;  %v291_v36 = vsel %vm283_vm6, %v270_v15, %v273_v16  ;;  %v295_v41 = vsel %vm283_vm6, %v273_v16, %v276_v28 }
  0x30   :  { %v83_v24 = vsel %vm81_vm8, %v82_v30, %v2028_v14  ;;  %v288_v38 = vsel %vm286_vm10, %v276_v28, 2102212464  ;;  %v292_v40 = vsel %vm286_vm10, %v279_v32, 920167782  ;;  %v296_v46 = vsel %vm286_vm10, %v282_v34, 1326507024 }
  0x31   :  { %v84_v42 = vadd.s32 %v83_v24, %v79_v23  ;;  %v289_v43 = vsel %vm285_vm9, %v273_v16, %v288_v38  ;;  %v293_v44 = vsel %vm285_vm9, %v276_v28, %v292_v40  ;;  %v297_v49 = vsel %vm285_vm9, %v279_v32, %v296_v46 }
  0x32   :  { %v290_v47 = vsel %vm284_vm7, %v287_v26, %v289_v43  ;;  %v294_v48 = vsel %vm284_vm7, %v291_v36, %v293_v44  ;;  %v546_v50 = vadd.s32 1, %v2003_v39  ;;  %v298_v52 = vsel %vm284_vm7, %v295_v41, %v297_v49 }
  0x33   :  { %v85_v51 = vadd.s32 536870912, %v84_v42  ;;  %v2054_v53 = vmul.u32.u64.low %v1996_v27, %v294_v48  ;;  %v2055_v54 = vmul.u32.u64.high %v1996_v27, %v294_v48, %v2054_v53  ;;  %v306_v58 = vmul.u32 %v1996_v27, %v290_v47 }
  0x34   :  { %v2059_v55 = vmul.u32.u64.low %v1996_v27, %v298_v52  ;;  %v2060_v56 = vmul.u32.u64.high %v1996_v27, %v298_v52, %v2059_v55  ;;  %vm547_vm11 = vcmp.gt.s32.totalorder %v546_v50, 0  ;;  %v536_v10 = vand.u32 2147483647, %v1989_v12 }
  0x35   :  { %v2062_v57 = vshrl.u32 %v85_v51, 30  ;;  %v309_v39 = vadd.s32 1, %v2055_v54  ;;  %v548_v59 = vsel %vm547_vm11, %v546_v50, 0  ;;  %vm26_vm5 = vcmp.lt.s32.totalorder %v1977_v0, 0 }
  0x36   :  { %vm308_vm12 = vc.u32 %v2060_v56, %v2054_v53  ;;  %v550_v62 = vand.u32 31, %v548_v59  ;;  %v549_v14 = vshrl.u32 %v548_v59, 5  ;;  %v543_v32 = vand.u32 8388607, %v536_v10 }
  0x37   :  { %v310_v25 = vsel %vm308_vm12, %v309_v39, %v2055_v54  ;;  %v87_v60 = vshll.u32 %v2062_v57, 30  ;;  %vm2135_vm6 = vcmp.le.f32.partialorder %v24_v2, 0.7853982  ;;  %vm253_vm7 = vcmp.lt.s32.totalorder %v1979_v1, 0 }
  0x38   :  { %v311_v61 = vadd.s32 %v310_v25, %v306_v58  ;;  %v551_v5 = vsub.s32 32, %v550_v62  ;;  %v562_v7 = vshll.u32 %v1948_v35, %v550_v62  ;;  %v553_v15 = vshll.u32 %v3003_v29, %v550_v62 }
  0x39   :  { %v2070_v3 = vsub.s32 %v84_v42, %v87_v60  ;;  %v556_v16 = vshll.u32 %v1946_v31, %v550_v62  ;;  %v565_v17 = vshll.u32 %v1949_v37, %v550_v62  ;;  %v559_v21 = vshll.u32 %v1947_v33, %v550_v62 }
  0x3a   :  { %v312_v63 = vadd.s32 536870912, %v311_v61  ;;  %v563_v8 = vshrl.u32 %v1949_v37, %v551_v5  ;;  %v566_v18 = vshrl.u32 %v3001_v45, %v551_v5  ;;  %v554_v19 = vshrl.u32 %v1946_v31, %v551_v5 }
  0x3b   :  { %v90_v27 = vsub.s32 0, %v2070_v3  ;;  %v557_v20 = vshrl.u32 %v1947_v33, %v551_v5  ;;  %v560_v22 = vshrl.u32 %v1948_v35, %v551_v5  ;;  %vm571_vm13 = vcmp.lt.s32.totalorder %v549_v14, 4 }
  0x3c   :  { %v2072_v6 = vshrl.u32 %v312_v63, 30  ;;  %v564_v28 = vor.u32 %v563_v8, %v562_v7  ;;  %v567_v34 = vor.u32 %v566_v18, %v565_v17  ;;  %v555_v26 = vor.u32 %v554_v19, %v553_v15 }
  0x3d   :  { %v1787_v23 = vmin.u32 %v90_v27, %v2070_v3  ;;  %v558_v36 = vor.u32 %v557_v20, %v556_v16  ;;  %v561_v24 = vor.u32 %v560_v22, %v559_v21  ;;  %vm568_vm14 = vcmp.lt.s32.totalorder %v549_v14, 1  ;;  %v2111_v27 = vld [vmem:[#allocation2 + $0x18] sm:$0xff] }
  0x3e   :  { %v314_v9 = vshll.u32 %v2072_v6, 30  ;;  %vm570_vm15 = vcmp.lt.s32.totalorder %v549_v14, 3  ;;  %v577_v40 = vsel %vm571_vm13, %v564_v28, 920167782  ;;  %v544_v42 = vor.u32 8388608, %v543_v32 }
  0x3f   :  { %v92_v38 = vclz %v1787_v23  ;;  %v581_v43 = vsel %vm571_vm13, %v567_v34, 1326507024  ;;  %vm569_vm0 = vcmp.lt.s32.totalorder %v549_v14, 2  ;;  %v576_v44 = vsel %vm568_vm14, %v555_v26, %v558_v36 }
  0x40   :  { %v2088_v30 = vsub.s32 %v311_v61, %v314_v9  ;;  %v578_v46 = vsel %vm570_vm15, %v561_v24, %v577_v40  ;;  %v580_v48 = vsel %vm568_vm14, %v558_v36, %v561_v24  ;;  %v582_v49 = vsel %vm570_vm15, %v564_v28, %v581_v43 }
  0x41   :  { %v1788_v47 = vadd.s32 4294967294, %v92_v38  ;;  %v584_v51 = vshll.u32 %v544_v42, 8  ;;  %v579_v52 = vsel %vm569_vm0, %v576_v44, %v578_v46  ;;  %v583_v54 = vsel %vm569_vm0, %v580_v48, %v582_v49 }
  0x42   :  { %v317_v41 = vsub.s32 0, %v2088_v30  ;;  %v552_v59 = vshrl.u32 %v3003_v29, %v551_v5  ;;  %v573_v62 = vsel %vm571_vm13, %v561_v24, 2102212464  ;;  %v844_v15 = vand.u32 2139095040, %v2111_v27 }
  0x43   :  { %vm1789_vm1 = vcmp.lt.s32.totalorder %v1788_v47, 0  ;;  %v2102_v58 = vmul.u32.u64.low %v584_v51, %v579_v52  ;;  %v2103_v39 = vmul.u32.u64.high %v584_v51, %v579_v52, %v2102_v58  ;;  %v574_v9 = vsel %vm570_vm15, %v558_v36, %v573_v62 }
  0x44   :  { %v1795_v50 = vmin.u32 %v317_v41, %v2088_v30  ;;  %v2107_v25 = vmul.u32.u64.low %v584_v51, %v583_v54  ;;  %v2108_v60 = vmul.u32.u64.high %v584_v51, %v583_v54, %v2107_v25  ;;  %v95_v61 = vsel %vm1789_vm1, 0, %v1788_v47 }
  0x45   :  { %v100_v7 = vsub.s32 4294967266, %v95_v61  ;;  %v572_v8 = vsel %vm568_vm14, %v552_v59, %v555_v26  ;;  %v594_v5 = vadd.s32 1, %v2103_v39  ;;  %v80_v17 = vadd.s32 %v2027_v13, %v2024_v11 }
  0x46   :  { %v319_v55 = vclz %v1795_v50  ;;  %v575_v16 = vsel %vm569_vm0, %v572_v8, %v574_v9  ;;  %v96_v18 = vsub.s32 32, %v95_v61  ;;  %vm593_vm3 = vc.u32 %v2108_v60, %v2102_v58 }
  0x47   :  { %v101_v19 = vadd.s32 127, %v100_v7  ;;  %v591_v21 = vmul.u32 %v584_v51, %v575_v16  ;;  %v845_v22 = vshrl.u32 %v844_v15, 23  ;;  %v595_v23 = vsel %vm593_vm3, %v594_v5, %v2103_v39 }
  0x48   :  { %v1796_v63 = vadd.s32 4294967294, %v319_v55  ;;  %v97_v28 = vshll.u32 %v2070_v3, %v95_v61  ;;  %v98_v32 = vshrl.u32 %v80_v17, %v96_v18  ;;  %v307_v11 = vadd.s32 %v2054_v53, %v2060_v56 }
  0x49   :  { %v102_v14 = vshll.u32 %v101_v19, 23  ;;  %v596_v26 = vadd.s32 %v595_v23, %v591_v21  ;;  %v1810_v36 = vadd.s32 4294967169, %v845_v22  ;;  %v110_v61 = vsub.s32 4, %v2062_v57 }
  0x4a   :  { %vm1797_vm2 = vcmp.lt.s32.totalorder %v1796_v63, 0  ;;  %v99_v24 = vor.u32 %v98_v32, %v97_v28  ;;  %v841_v2 = vand.u32 2147483647, %v2111_v27  ;;  %vm2169_vm8 = vcmp.le.f32.partialorder %v251_v4, 0.7853982 }
  0x4b   :  { %v322_v20 = vsel %vm1797_vm2, 0, %v1796_v63  ;;  %v103_v38 = vor.u32 4788187, %v102_v14  ;;  %v597_v41 = vadd.s32 536870912, %v596_v26  ;;  %v851_v42 = vadd.s32 1, %v1810_v36 }
  0x4c   :  { %v327_v34 = vsub.s32 4294967266, %v322_v20  ;;  %v323_v13 = vsub.s32 32, %v322_v20  ;;  %v106_v44 = vcvt.s32.f32 %v99_v24  ;;  %v324_v46 = vshll.u32 %v2088_v30, %v322_v20 }
  0x4d   :  { %v104_v43 = vand.u32 2147483647, %v103_v38  ;;  %v2127_v48 = vshrl.u32 %v597_v41, 30  ;;  %vm852_vm4 = vcmp.gt.s32.totalorder %v851_v42, 0  ;;  %v111_v9 = vsel %vm26_vm5, %v110_v61, %v2062_v57 }
  0x4e   :  { %v328_v40 = vadd.s32 127, %v327_v34  ;;  %v325_v47 = vshrl.u32 %v307_v11, %v323_v13  ;;  %v853_v52 = vsel %vm852_vm4, %v851_v42, 0  ;;  %v848_v36 = vand.u32 8388607, %v841_v2 }
  0x4f   :  { %v107_v49 = vmul.f32 %v106_v44, %v104_v43  ;;  %v599_v54 = vshll.u32 %v2127_v48, 30  ;;  %v855_v56 = vand.u32 31, %v853_v52  ;;  %v2152_v17 = vshrl.u32 %v853_v52, 5 }
  0x50   :  { %v329_v3 = vshll.u32 %v328_v40, 23  ;;  %v326_v50 = vor.u32 %v325_v47, %v324_v46  ;;  %v113_v38 = vsel %vm2135_vm6, 0, %v111_v9  ;;  %v337_v13 = vsub.s32 4, %v2072_v6 }
  0x51   :  { %v108_v53 = vxor.u32 2147483648, %v107_v49  ;;  %v2131_v59 = vsub.s32 %v596_v26, %v599_v54  ;;  %v2140_v62 = vsub.s32 32, %v855_v56  ;;  %v867_v15 = vshll.u32 %v1948_v35, %v855_v56 }
  0x52   :  { %v330_v51 = vor.u32 4788187, %v329_v3  ;;  %v333_v39 = vcvt.s32.f32 %v326_v50  ;;  %v870_v18 = vshll.u32 %v1949_v37, %v855_v56  ;;  %v858_v57 = vshll.u32 %v3003_v29, %v855_v56 }
  0x53   :  { %v109_v25 = vsel %vm26_vm5, %v108_v53, %v107_v49  ;;  %v602_v7 = vsub.s32 0, %v2131_v59  ;;  %v868_v16 = vshrl.u32 %v1949_v37, %v2140_v62  ;;  %v871_v19 = vshrl.u32 %v3001_v45, %v2140_v62 }
  0x54   :  { %v331_v55 = vand.u32 2147483647, %v330_v51  ;;  %v112_v8 = vsel %vm2135_vm6, %v1977_v0, %v109_v25  ;;  %v859_v21 = vshrl.u32 %v1946_v31, %v2140_v62  ;;  %v861_v22 = vshll.u32 %v1946_v31, %v855_v56 }
  0x55   :  { %1868 = vcosq.f32 %v112_v8  ;;  %v1803_v20 = vmin.u32 %v602_v7, %v2131_v59  ;;  %v862_v23 = vshrl.u32 %v1947_v33, %v2140_v62  ;;  %v864_v28 = vshll.u32 %v1947_v33, %v855_v56 }
  0x56   :  { %v334_v63 = vmul.f32 %v333_v39, %v331_v55  ;;  %v865_v32 = vshrl.u32 %v1948_v35, %v2140_v62  ;;  %1870 = vsinq.f32 %v112_v8  ;;  %v869_v34 = vor.u32 %v868_v16, %v867_v15  ;;  %v2202_v55 = vld [vmem:[#allocation2 + $0x20] sm:$0xff] }
  0x57   :  { %v872_v24 = vor.u32 %v871_v19, %v870_v18  ;;  %vm876_vm9 = vcmp.lt.s32.totalorder %v2152_v17, 4  ;;  %v604_v11 = vclz %v1803_v20  ;;  %v860_v4 = vor.u32 %v859_v21, %v858_v57 }
  0x58   :  { %v335_v5 = vxor.u32 2147483648, %v334_v63  ;;  %v863_v40 = vor.u32 %v862_v23, %v861_v22  ;;  %v866_v41 = vor.u32 %v865_v32, %v864_v28  ;;  %vm873_vm10 = vcmp.lt.s32.totalorder %v2152_v17, 1 }
  0x59   :  { %vm875_vm11 = vcmp.lt.s32.totalorder %v2152_v17, 3  ;;  %v882_v43 = vsel %vm876_vm9, %v869_v34, 920167782  ;;  %v849_v44 = vor.u32 8388608, %v848_v36  ;;  %v886_v46 = vsel %vm876_vm9, %v872_v24, 1326507024 }
  0x5a   :  { %v336_v26 = vsel %vm253_vm7, %v335_v5, %v334_v63  ;;  %v117_v47 = vand.u32 3, %v113_v38  ;;  %v220_v3 = vadd.s32 3, %v113_v38  ;;  %v1804_v49 = vadd.s32 4294967294, %v604_v11 }
  0x5b   :  { %v339_v42 = vsel %vm2169_vm8, %v1979_v1, %v336_v26  ;;  %vm874_vm12 = vcmp.lt.s32.totalorder %v2152_v17, 2  ;;  %v881_v50 = vsel %vm873_vm10, %v860_v4, %v863_v40  ;;  %v883_v51 = vsel %vm875_vm11, %v866_v41, %v882_v43 }
  0x5c   :  { %1872 = vcosq.f32 %v339_v42  ;;  %v338_v54 = vsel %vm253_vm7, %v337_v13, %v2072_v6  ;;  %v885_v53 = vsel %vm873_vm10, %v863_v40, %v866_v41  ;;  %v887_v56 = vsel %vm875_vm11, %v869_v34, %v886_v46 }
  0x5d   :  { %1874 = vsinq.f32 %v339_v42  ;;  %v2204_v39 = vshll.u32 %v849_v44, 8  ;;  %vm1805_vm13 = vcmp.lt.s32.totalorder %v1804_v49, 0  ;;  %v884_v25 = vsel %vm874_vm12, %v881_v50, %v883_v51 }
  0x5e   :  { %v340_v61 = vsel %vm2169_vm8, 0, %v338_v54  ;;  %v888_v6 = vsel %vm874_vm12, %v885_v53, %v887_v56  ;;  %v1134_v63 = vand.u32 2139095040, %v2202_v55  ;;  %vm116_vm14 = vweird.f32 %v1977_v0 }
  0x5f   :  { %v1869_v52 = vpop.eup %1868  ;;  %vm119_vm15 = vcmp.eq.s32.totalorder %v117_v47, 0  ;;  %vm122_vm0 = vcmp.eq.s32.totalorder %v117_v47, 2  ;;  %v221_v8 = vand.u32 3, %v220_v3  ;;  %v2214_v15 = vsel %vm1805_vm13, 0, %v1804_v49 }
  0x60   :  { %v1871_v30 = vpop.eup %1870  ;;  %v123_v7 = vxor.u32 2147483648, %v1869_v52  ;;  %v2217_v16 = vmul.u32.u64.low %v2204_v39, %v884_v25  ;;  %v2218_v5 = vmul.u32.u64.high %v2204_v39, %v884_v25, %v2217_v16  ;;  %v447_v18 = vadd.s32 3, %v340_v61 }
  0x61   :  { %v120_v9 = vxor.u32 2147483648, %v1871_v30  ;;  %v857_v19 = vshrl.u32 %v3003_v29, %v2140_v62  ;;  %v2224_v20 = vmul.u32.u64.low %v2204_v39, %v888_v6  ;;  %v2225_v57 = vmul.u32.u64.high %v2204_v39, %v888_v6, %v2224_v20 }
  0x62   :  { %v344_v21 = vand.u32 3, %v340_v61  ;;  %v622_v22 = vsub.s32 4, %v2127_v48  ;;  %v878_v23 = vsel %vm876_vm9, %v866_v41, 2102212464  ;;  %v1135_v28 = vshrl.u32 %v1134_v63, 23 }
  0x63   :  { %vm226_vm1 = vcmp.eq.s32.totalorder %v221_v8, 2  ;;  %vm2232_vm2 = vcmp.le.f32.partialorder %v536_v10, 0.7853982  ;;  %vm538_vm3 = vcmp.lt.s32.totalorder %v1989_v12, 0  ;;  %v612_v62 = vsub.s32 4294967266, %v2214_v15 }
  0x64   :  { %vm118_vm4 = vcmp.lt.s32.totalorder %v117_v47, 2  ;;  %v121_v34 = vsel %vm119_vm15, %v1869_v52, %v120_v9  ;;  %v124_v26 = vsel %vm122_vm0, %v123_v7, %v1871_v30  ;;  %vm223_vm5 = vcmp.eq.s32.totalorder %v221_v8, 0 }
  0x65   :  { %vm222_vm6 = vcmp.lt.s32.totalorder %v221_v8, 2  ;;  %v448_v24 = vand.u32 3, %v447_v18  ;;  %v877_v10 = vsel %vm873_vm10, %v857_v19, %v860_v4  ;;  %v879_v38 = vsel %vm875_vm11, %v863_v40, %v878_v23 }
  0x66   :  { %v1873_v14 = vpop.eup %1872  ;;  %v228_v11 = vsel %vm226_vm1, %v123_v7, %v1871_v30  ;;  %vm345_vm7 = vcmp.lt.s32.totalorder %v344_v21, 2  ;;  %v592_v13 = vadd.s32 %v2102_v58, %v2108_v60  ;;  %v623_v41 = vsel %vm538_vm3, %v622_v22, %v2127_v48 }
  0x67   :  { %v1875_v36 = vpop.eup %1874  ;;  %v125_v42 = vsel %vm118_vm4, %v121_v34, %v124_v26  ;;  %v225_v43 = vsel %vm223_vm5, %v1869_v52, %v120_v9  ;;  %vm343_vm8 = vweird.f32 %v1979_v1  ;;  %v608_v44 = vsub.s32 32, %v2214_v15 }
  0x68   :  { %v613_v4 = vadd.s32 127, %v612_v62  ;;  %v347_v46 = vxor.u32 2147483648, %v1875_v36  ;;  %v350_v47 = vxor.u32 2147483648, %v1873_v14  ;;  %v880_v40 = vsel %vm874_vm12, %v877_v10, %v879_v38 }
  0x69   :  { %v899_v3 = vadd.s32 1, %v2218_v5  ;;  %vm346_vm9 = vcmp.eq.s32.totalorder %v344_v21, 0  ;;  %vm349_vm10 = vcmp.eq.s32.totalorder %v344_v21, 2  ;;  %vm450_vm11 = vcmp.eq.s32.totalorder %v448_v24, 0 }
  0x6a   :  { %vm898_vm13 = vc.u32 %v2225_v57, %v2217_v16  ;;  %v126_v58 = vsel %vm116_vm14, nan, %v125_v42  ;;  %v229_v60 = vsel %vm222_vm6, %v225_v43, %v228_v11  ;;  %vm453_vm15 = vcmp.eq.s32.totalorder %v448_v24, 2 }
  0x6b   :  { %v625_v48 = vsel %vm2232_vm2, 0, %v623_v41  ;;  %v609_v17 = vshll.u32 %v2131_v59, %v2214_v15  ;;  %v610_v49 = vshrl.u32 %v592_v13, %v608_v44  ;;  %v614_v50 = vshll.u32 %v613_v4, 23 }
  0x6c   :  { %v896_v51 = vmul.u32 %v2204_v39, %v880_v40  ;;  %v348_v52 = vsel %vm346_vm9, %v1873_v14, %v347_v46  ;;  %v351_v54 = vsel %vm349_vm10, %v350_v47, %v1875_v36  ;;  %v900_v53 = vsel %vm898_vm13, %v899_v3, %v2218_v5 }
  0x6d   :  { %v1818_v56 = vadd.s32 4294967169, %v1135_v28  ;;  %v230_v30 = vsel %vm116_vm14, nan, %v229_v60  ;;  %vm449_vm12 = vcmp.lt.s32.totalorder %v448_v24, 2  ;;  %v452_v25 = vsel %vm450_vm11, %v1873_v14, %v347_v46 }
  0x6e   :  { %v455_v61 = vsel %vm453_vm15, %v350_v47, %v1875_v36  ;;  %v231_v6 = vmul.f32 0.14566852, %v126_v58  ;;  %v2269_v63 = vand.u32 3, %v625_v48  ;;  %v732_v59 = vadd.s32 3, %v625_v48 }
  0x6f   :  { %v3000_v7 = vand.u32 2147483647, %v2202_v55  ;;  %v352_v39 = vsel %vm345_vm7, %v348_v52, %v351_v54  ;;  %v611_v8 = vor.u32 %v610_v49, %v609_v17  ;;  %v615_v9 = vor.u32 4788187, %v614_v50 }
  0x70   :  { %v2273_v15 = vadd.s32 %v900_v53, %v896_v51  ;;  %v232_v5 = vmul.f32 -0.44328415, %v230_v30  ;;  %v234_v18 = vmul.f32 -0.44328415, %v126_v58  ;;  %v456_v0 = vsel %vm449_vm12, %v452_v25, %v455_v61 }
  0x71   :  { %v1141_v19 = vadd.s32 1, %v1818_v56  ;;  %v235_v20 = vmul.f32 -0.14566852, %v230_v30  ;;  %v237_v22 = vmul.f32 0.89587253, %v126_v58  ;;  %v353_v14 = vsel %vm343_vm8, nan, %v352_v39 }
  0x72   :  { %v238_v23 = vmul.f32 0.4384093, %v230_v30  ;;  %v240_v28 = vmul.f32 0.4384093, %v126_v58  ;;  %v241_v62 = vmul.f32 -0.89587253, %v230_v30  ;;  %v618_v36 = vcvt.s32.f32 %v611_v8 }
  0x73   :  { %v2277_v34 = vand.u32 3, %v732_v59  ;;  %v457_v21 = vsel %vm343_vm8, nan, %v456_v0  ;;  %v616_v26 = vand.u32 2147483647, %v615_v9  ;;  %v902_v24 = vadd.s32 536870912, %v2273_v15 }
  0x74   :  { %v2282_v10 = vadd.f32 %v232_v5, %v231_v6  ;;  %v243_v38 = vmul.f32 -0.41975367, %v126_v58  ;;  %v244_v11 = vmul.f32 0.7818545, %v230_v30  ;;  %vm1142_vm14 = vcmp.gt.s32.totalorder %v1141_v19, 0 }
  0x75   :  { %v2284_v13 = vadd.f32 %v238_v23, %v237_v22  ;;  %v246_v41 = vmul.f32 0.7818545, %v126_v58  ;;  %v458_v42 = vmul.f32 0.89301956, %v353_v14  ;;  %v461_v43 = vmul.f32 -0.20026283, %v353_v14 }
  0x76   :  { %v459_v44 = vmul.f32 0.20026283, %v457_v21  ;;  %v462_v4 = vmul.f32 0.89301956, %v457_v21  ;;  %v464_v46 = vmul.f32 -0.3574205, %v353_v14  ;;  %v619_v1 = vmul.f32 %v618_v36, %v616_v26 }
  0x77   :  { %v465_v47 = vmul.f32 -0.2284971, %v457_v21  ;;  %v2286_v40 = vshrl.u32 %v902_v24, 30  ;;  %v1143_v3 = vsel %vm1142_vm14, %v1141_v19, 0  ;;  %v2288_v60 = vadd.f32 %v235_v20, %v234_v18 }
  0x78   :  { %v467_v48 = vmul.f32 0.2284971, %v353_v14  ;;  %v468_v17 = vmul.f32 -0.3574205, %v457_v21  ;;  %v481_v49 = vmul.f32 0.90556043, %v2282_v10  ;;  %v2291_v50 = vadd.f32 %v241_v62, %v240_v28 }
  0x79   :  { %v470_v51 = vmul.f32 0.27343497, %v353_v14  ;;  %v471_v58 = vmul.f32 -0.95272446, %v457_v21  ;;  %v495_v52 = vmul.f32 0.90556043, %v2284_v13  ;;  %v2294_v54 = vadd.f32 %v244_v11, %v243_v38 }
  0x7a   :  { %v247_v53 = vmul.f32 0.41975367, %v230_v30  ;;  %v460_v56 = vadd.f32 %v459_v44, %v458_v42  ;;  %v1145_v25 = vand.u32 31, %v1143_v3  ;;  %v2296_v61 = vadd.f32 %v462_v4, %v461_v43 }
  0x7b   :  { %v466_v6 = vadd.f32 %v465_v47, %v464_v46  ;;  %v620_v59 = vxor.u32 2147483648, %v619_v1  ;;  %v904_v39 = vshll.u32 %v2286_v40, 30  ;;  %v2299_v8 = vadd.f32 %v468_v17, %v467_v48 }
  0x7c   :  { %v473_v9 = vmul.f32 0.95272446, %v353_v14  ;;  %v474_v5 = vmul.f32 0.27343497, %v457_v21  ;;  %v483_v18 = vmul.f32 -0.13247433, %v2288_v60  ;;  %v472_v0 = vadd.f32 %v471_v58, %v470_v51 }
  0x7d   :  { %v482_v19 = vadd.f32 0.35644183, %v481_v49  ;;  %v496_v20 = vadd.f32 0.029088125, %v495_v52  ;;  %v497_v22 = vmul.f32 -0.13247433, %v2291_v50  ;;  %v2303_v30 = vadd.f32 %v247_v53, %v246_v41 }
  0x7e   :  { %v476_v23 = vmul.f32 0.8844659, %v460_v56  ;;  %v2306_v28 = vmul.f32 0.90556043, %v2294_v54  ;;  %v2308_v62 = vsub.s32 32, %v1145_v25  ;;  %v477_v26 = vmul.f32 %v466_v6, %v2282_v10 }
  0x7f   :  { %v485_v14 = vmul.f32 0.8844659, %v2296_v61  ;;  %v621_v21 = vsel %vm538_vm3, %v620_v59, %v619_v1  ;;  %v2315_v36 = vsub.s32 %v2273_v15, %v904_v39  ;;  %v2317_v24 = vadd.f32 %v474_v5, %v473_v9 }
  0x80   :  { %v486_v38 = vmul.f32 %v2299_v8, %v2282_v10  ;;  %v490_v11 = vmul.f32 0.07217855, %v460_v56  ;;  %v491_v41 = vmul.f32 %v466_v6, %v2284_v13  ;;  %v479_v42 = vmul.f32 %v472_v0, %v2288_v60 }
  0x81   :  { %v2323_v43 = vadd.f32 %v483_v18, %v482_v19  ;;  %v2325_v44 = vadd.f32 %v497_v22, %v496_v20  ;;  %v499_v4 = vmul.f32 0.07217855, %v2296_v61  ;;  %v500_v15 = vmul.f32 %v2299_v8, %v2284_v13 }
  0x82   :  { %v624_v46 = vsel %vm2232_vm2, %v1989_v12, %v621_v21  ;;  %v1160_v47 = vshll.u32 %v1949_v37, %v1145_v25  ;;  %v1161_v1 = vshrl.u32 %v3001_v45, %v2308_v62  ;;  %v478_v48 = vadd.f32 %v477_v26, %v476_v23 }
  0x83   :  { %v493_v17 = vmul.f32 %v472_v0, %v2291_v50  ;;  %v907_v49 = vsub.s32 0, %v2315_v36  ;;  %v2338_v51 = vshrl.u32 %v1143_v3, 5  ;;  %v487_v58 = vadd.f32 %v486_v38, %v485_v14 }
  0x84   :  { %v488_v52 = vmul.f32 %v2317_v24, %v2288_v60  ;;  %v492_v53 = vadd.f32 %v491_v41, %v490_v11  ;;  %v1151_v32 = vshll.u32 %v1946_v31, %v1145_v25  ;;  %1876 = vcosq.f32 %v624_v46 }
  0x85   :  { %v1152_v59 = vshrl.u32 %v1947_v33, %v2308_v62  ;;  %v1154_v39 = vshll.u32 %v1947_v33, %v1145_v25  ;;  %v1155_v9 = vshrl.u32 %v1948_v35, %v2308_v62  ;;  %v501_v5 = vadd.f32 %v500_v15, %v499_v4 }
  0x86   :  { %1878 = vsinq.f32 %v624_v46  ;;  %v1138_v3 = vand.u32 8388607, %v3000_v7  ;;  %v1162_v18 = vor.u32 %v1161_v1, %v1160_v47  ;;  %v1811_v19 = vmin.u32 %v907_v49, %v2315_v36 }
  0x87   :  { %v1157_v20 = vshll.u32 %v1948_v35, %v1145_v25  ;;  %v1158_v22 = vshrl.u32 %v1949_v37, %v2308_v62  ;;  %vm1166_vm0 = vcmp.lt.s32.totalorder %v2338_v51, 4  ;;  %v2355_v23 = vadd.f32 %v479_v42, %v478_v48 }
  0x88   :  { %v502_v26 = vmul.f32 %v2317_v24, %v2291_v50  ;;  %v504_v14 = vmul.f32 0.46098852, %v460_v56  ;;  %v505_v21 = vmul.f32 %v466_v6, %v2294_v54  ;;  %v2360_v38 = vadd.f32 %v488_v52, %v487_v58 }
  0x89   :  { %v1148_v11 = vshll.u32 %v3003_v29, %v1145_v25  ;;  %v1153_v41 = vor.u32 %v1152_v59, %v1151_v32  ;;  %v1156_v4 = vor.u32 %v1155_v9, %v1154_v39  ;;  %v1149_v15 = vshrl.u32 %v1946_v31, %v2308_v62 }
  0x8a   :  { %vm1163_vm1 = vcmp.lt.s32.totalorder %v2338_v51, 1  ;;  %vm1165_vm2 = vcmp.lt.s32.totalorder %v2338_v51, 3  ;;  %v1176_v42 = vsel %vm1166_vm0, %v1162_v18, 1326507024  ;;  %v2369_v46 = vadd.f32 %v493_v17, %v492_v53 }
  0x8b   :  { %v909_v56 = vclz %v1811_v19  ;;  %v1139_v6 = vor.u32 8388608, %v1138_v3  ;;  %v1159_v47 = vor.u32 %v1158_v22, %v1157_v20  ;;  %v2371_v1 = vadd.f32 %v502_v26, %v501_v5  ;;  %v1420_v3 = vld [vmem:[#allocation2 + $0x28] sm:$0xff] }
  0x8c   :  { %v507_v25 = vmul.f32 %v472_v0, %v2303_v30  ;;  %v518_v48 = vmul.f32 -0.12327462, %v2282_v10  ;;  %v523_v49 = vmul.f32 -0.12327462, %v2284_v13  ;;  %vm631_vm3 = vcmp.eq.s32.totalorder %v2269_v63, 0 }
  0x8d   :  { %vm634_vm4 = vcmp.eq.s32.totalorder %v2269_v63, 2  ;;  %v528_v58 = vmul.f32 -0.12327462, %v2294_v54  ;;  %vm1164_vm5 = vcmp.lt.s32.totalorder %v2338_v51, 2  ;;  %v1175_v17 = vsel %vm1163_vm1, %v1153_v41, %v1156_v4 }
  0x8e   :  { %v1177_v52 = vsel %vm1165_vm2, %v1159_v47, %v1176_v42  ;;  %v506_v53 = vadd.f32 %v505_v21, %v504_v14  ;;  %v510_v0 = vadd.f32 0.18577945, %v2306_v28  ;;  %v511_v10 = vmul.f32 -0.13247433, %v2303_v30  ;;  %v1877_v32 = vpop.eup %1876 }
  0x8f   :  { %v1150_v13 = vor.u32 %v1149_v15, %v1148_v11  ;;  %v513_v59 = vmul.f32 0.46098852, %v2296_v61  ;;  %vm630_vm6 = vcmp.lt.s32.totalorder %v2269_v63, 2  ;;  %v1812_v39 = vadd.s32 4294967294, %v909_v56 }
  0x90   :  { %v1172_v9 = vsel %vm1166_vm0, %v1159_v47, 920167782  ;;  %v2390_v5 = vshll.u32 %v1139_v6, 8  ;;  %v1879_v18 = vpop.eup %1878  ;;  %v519_v19 = vadd.f32 -0.1341821, %v518_v48  ;;  %v1178_v22 = vsel %vm1164_vm5, %v1175_v17, %v1177_v52 }
  0x91   :  { %v520_v20 = vmul.f32 0.08880601, %v2288_v60  ;;  %v525_v28 = vmul.f32 0.08880601, %v2291_v50  ;;  %v524_v26 = vadd.f32 -0.01095019, %v523_v49  ;;  %v1147_v21 = vshrl.u32 %v3003_v29, %v2308_v62 }
  0x92   :  { %v529_v61 = vadd.f32 -0.069936454, %v528_v58  ;;  %v530_v14 = vmul.f32 0.08880601, %v2303_v30  ;;  %vm628_vm7 = vweird.f32 %v1989_v12  ;;  %v635_v11 = vxor.u32 2147483648, %v1877_v32 }
  0x93   :  { %v1168_v15 = vsel %vm1166_vm0, %v1156_v4, 2102212464  ;;  %v1171_v60 = vsel %vm1163_vm1, %v1150_v13, %v1153_v41  ;;  %v1173_v50 = vsel %vm1165_vm2, %v1156_v4, %v1172_v9  ;;  %v632_v42 = vxor.u32 2147483648, %v1879_v18 }
  0x94   :  { %vm1813_vm8 = vcmp.lt.s32.totalorder %v1812_v39, 0  ;;  %v2407_v56 = vmul.u32.u64.low %v2390_v5, %v1178_v22  ;;  %v2408_v6 = vmul.u32.u64.high %v2390_v5, %v1178_v22, %v2407_v56  ;;  %v2410_v47 = vadd.f32 %v507_v25, %v506_v53 }
  0x95   :  { %v514_v62 = vmul.f32 %v2299_v8, %v2294_v54  ;;  %v516_v48 = vmul.f32 %v2317_v24, %v2303_v30  ;;  %v2416_v49 = vmul.f32 0.98994946, %v1420_v3  ;;  %v2418_v58 = vadd.f32 %v511_v10, %v510_v0 }
  0x96   :  { %v1167_v4 = vsel %vm1163_vm1, %v1147_v21, %v1150_v13  ;;  %v1169_v17 = vsel %vm1165_vm2, %v1153_v41, %v1168_v15  ;;  %v1174_v25 = vsel %vm1164_vm5, %v1171_v60, %v1173_v50  ;;  %v521_v52 = vadd.f32 %v520_v20, %v519_v19 }
  0x97   :  { %3012 = vst [vmem:[#allocation8_spill] sm:$0xff] %v2416_v49  ;;  %vm735_vm9 = vcmp.eq.s32.totalorder %v2277_v34, 0  ;;  %vm738_vm10 = vcmp.eq.s32.totalorder %v2277_v34, 2  ;;  %v912_v54 = vsel %vm1813_vm8, 0, %v1812_v39  ;;  %v526_v8 = vadd.f32 %v525_v28, %v524_v26 }
  0x98   :  { %v531_v30 = vadd.f32 %v530_v14, %v529_v61  ;;  %v633_v24 = vsel %vm631_vm3, %v1877_v32, %v632_v42  ;;  %v636_v53 = vsel %vm634_vm4, %v635_v11, %v1879_v18  ;;  %v1170_v41 = vsel %vm1164_vm5, %v1167_v4, %v1169_v17 }
  0x99   :  { %v2435_v0 = vmul.u32.u64.low %v2390_v5, %v1174_v25  ;;  %v2436_v10 = vmul.u32.u64.high %v2390_v5, %v1174_v25, %v2435_v0  ;;  %v1425_v13 = vand.u32 2139095040, %v2416_v49  ;;  %vm734_vm11 = vcmp.lt.s32.totalorder %v2277_v34, 2 }
  0x9a   :  { %v737_v39 = vsel %vm735_vm9, %v1877_v32, %v632_v42  ;;  %v740_v9 = vsel %vm738_vm10, %v635_v11, %v1879_v18  ;;  %v917_v3 = vsub.s32 4294967266, %v912_v54  ;;  %v515_v19 = vadd.f32 %v514_v62, %v513_v59 }
  0x9b   :  { %v2441_v20 = vadd.f32 0.13692565, %v521_v52  ;;  %v637_v28 = vsel %vm630_vm6, %v633_v24, %v636_v53  ;;  %v821_v51 = vmul.f32 0.10617824, %v2355_v23  ;;  %v2446_v22 = vadd.f32 -0.12704854, %v526_v8 }
  0x9c   :  { %v822_v26 = vmul.f32 -0.13898383, %v2323_v43  ;;  %v1186_v61 = vmul.u32 %v2390_v5, %v1170_v41  ;;  %vm1188_vm13 = vc.u32 %v2408_v6, %v2435_v0  ;;  %v2452_v34 = vadd.f32 -0.109128766, %v531_v30 }
  0x9d   :  { %v741_v32 = vsel %vm734_vm11, %v737_v39, %v740_v9  ;;  %v1189_v59 = vadd.s32 1, %v2436_v10  ;;  %v1426_v18 = vshrl.u32 %v1425_v13, 23  ;;  %v2457_v63 = vsel %vm628_vm7, nan, %v637_v28 }
  0x9e   :  { %3013 = vst [vmem:[#allocation9_spill] sm:$0xff] %v2452_v34  ;;  %v897_v14 = vadd.s32 %v2217_v16, %v2225_v57  ;;  %v913_v21 = vsub.s32 32, %v912_v54  ;;  %v918_v11 = vadd.s32 127, %v917_v3  ;;  %v824_v5 = vmul.f32 0.18068253, %v2360_v38 }
  0x9f   :  { %v827_v15 = vmul.f32 0.10617824, %v2369_v46  ;;  %v828_v60 = vmul.f32 -0.13898383, %v2325_v44  ;;  %v1190_v50 = vsel %vm1188_vm13, %v1189_v59, %v2436_v10  ;;  %v742_v42 = vsel %vm628_vm7, nan, %v741_v32 }
  0xa0   :  { %v2468_v56 = vmul.f32 0.18068253, %v2371_v1  ;;  %v2471_v62 = vmul.f32 0.10617824, %v2410_v47  ;;  %vm843_vm15 = vcmp.lt.s32.totalorder %v2111_v27, 0  ;;  %v1191_v16 = vadd.s32 %v1190_v50, %v1186_v61 }
  0xa1   :  { %v2474_v57 = vadd.f32 %v516_v48, %v515_v19  ;;  %v743_v4 = vmul.f32 0.29267108, %v2457_v63  ;;  %v834_v17 = vmul.f32 -0.13898383, %v2418_v58  ;;  %v1826_v25 = vadd.s32 4294967169, %v1426_v18 }
  0xa2   :  { %v914_v52 = vshll.u32 %v2315_v36, %v912_v54  ;;  %v915_v12 = vshrl.u32 %v897_v14, %v913_v21  ;;  %v919_v8 = vshll.u32 %v918_v11, 23  ;;  %v1192_v30 = vadd.s32 536870912, %v1191_v16 }
  0xa3   :  { %v745_v24 = vmul.f32 -0.17243645, %v742_v42  ;;  %v754_v53 = vmul.f32 -0.6317558, %v2457_v63  ;;  %v823_v41 = vadd.f32 %v822_v26, %v821_v51  ;;  %v2481_v10 = vmul.f32 0.18068253, %v2474_v57 }
  0xa4   :  { %vm2485_vm12 = vcmp.le.f32.partialorder %v841_v2, 0.7853982  ;;  %v747_v13 = vmul.f32 -0.29267108, %v2457_v63  ;;  %v749_v39 = vmul.f32 0.17243645, %v742_v42  ;;  %v916_v28 = vor.u32 %v915_v12, %v914_v52 }
  0xa5   :  { %v927_v36 = vsub.s32 4, %v2286_v40  ;;  %v2491_v54 = vshrl.u32 %v1192_v30, 30  ;;  %v744_v9 = vadd.f32 0.62016875, %v743_v4  ;;  %v751_v3 = vmul.f32 0.24386196, %v2457_v63 }
  0xa6   :  { %v758_v19 = vmul.f32 0.6317558, %v2457_v63  ;;  %v920_v51 = vor.u32 4788187, %v919_v8  ;;  %v1432_v2 = vadd.s32 1, %v1826_v25  ;;  %v825_v18 = vadd.f32 %v824_v5, %v823_v41 }
  0xa7   :  { %v1194_v26 = vshll.u32 %v2491_v54, 30  ;;  %v755_v61 = vadd.f32 0.24042967, %v754_v53  ;;  %v756_v32 = vmul.f32 -0.20755285, %v742_v42  ;;  %v928_v52 = vsel %vm843_vm15, %v927_v36, %v2286_v40 }
  0xa8   :  { %v765_v59 = vmul.f32 0.12340282, %v2457_v63  ;;  %v748_v14 = vadd.f32 0.62016875, %v747_v13  ;;  %v752_v21 = vmul.f32 0.4138994, %v742_v42  ;;  %v923_v8 = vcvt.s32.f32 %v916_v28 }
  0xa9   :  { %v760_v11 = vmul.f32 0.20755285, %v742_v42  ;;  %v2497_v50 = vsub.s32 %v1191_v16, %v1194_v26  ;;  %v759_v4 = vadd.f32 0.24042967, %v758_v19  ;;  %v762_v30 = vmul.f32 0.29352406, %v2457_v63 }
  0xaa   :  { %v763_v7 = vmul.f32 -0.8934376, %v742_v42  ;;  %v769_v25 = vmul.f32 -0.12340282, %v2457_v63  ;;  %v921_v12 = vand.u32 2147483647, %v920_v51  ;;  %v2504_v53 = vadd.f32 %v745_v24, %v744_v9 }
  0xab   :  { %vm1433_vm14 = vcmp.gt.s32.totalorder %v1432_v2, 0  ;;  %v2506_v5 = vadd.f32 %v756_v32, %v755_v61  ;;  %v766_v41 = vadd.f32 -0.23996721, %v765_v59  ;;  %v767_v16 = vmul.f32 -0.6535958, %v742_v42 }
  0xac   :  { %v2508_v13 = vadd.f32 %v752_v21, %v751_v3  ;;  %v829_v19 = vadd.f32 %v828_v60, %v827_v15  ;;  %v930_v26 = vsel %vm2485_vm12, 0, %v928_v52  ;;  %v1197_v45 = vsub.s32 0, %v2497_v50 }
  0xad   :  { %v2513_v40 = vadd.f32 %v749_v39, %v748_v14  ;;  %v2515_v36 = vadd.f32 %v760_v11, %v759_v4  ;;  %v771_v28 = vmul.f32 0.6535958, %v742_v42  ;;  %v1434_v51 = vsel %vm1433_vm14, %v1432_v2, 0 }
  0xae   :  { %v2517_v24 = vadd.f32 %v763_v7, %v762_v30  ;;  %v770_v9 = vadd.f32 -0.23996721, %v769_v25  ;;  %v773_v61 = vmul.f32 0.92432404, %v2457_v63  ;;  %v924_v32 = vmul.f32 %v923_v8, %v921_v12 }
  0xaf   :  { %v2520_v3 = vadd.f32 %v767_v16, %v766_v41  ;;  %v774_v15 = vmul.f32 0.17451793, %v742_v42  ;;  %v776_v60 = vmul.f32 %v2504_v53, %v2355_v23  ;;  %v777_v39 = vmul.f32 %v2506_v5, %v2323_v43 }
  0xb0   :  { %v2527_v59 = vadd.f32 %v825_v18, %v2441_v20  ;;  %v2530_v2 = vadd.f32 %v834_v17, %v2471_v62  ;;  %v1819_v7 = vmin.u32 %v1197_v45, %v2497_v50  ;;  %v1436_v14 = vand.u32 31, %v1434_v51 }
  0xb1   :  { %v781_v63 = vmul.f32 %v2513_v40, %v2355_v23  ;;  %v782_v42 = vmul.f32 %v2515_v36, %v2323_v43  ;;  %v1037_v21 = vadd.s32 3, %v930_v26  ;;  %v3002_v11 = vand.u32 2147483647, %v2416_v49 }
  0xb2   :  { %3016 = vst [vmem:[#allocation10_spill] sm:$0xff] %v2527_v59  ;;  %v786_v4 = vmul.f32 %v2508_v13, %v2355_v23  ;;  %v787_v20 = vmul.f32 %v2517_v24, %v2323_v43  ;;  %v2543_v62 = vadd.f32 %v2468_v56, %v829_v19  ;;  %v925_v45 = vxor.u32 2147483648, %v924_v32 }
  0xb3   :  { %v2545_v17 = vadd.f32 %v771_v28, %v770_v9  ;;  %v2547_v18 = vadd.f32 %v774_v15, %v773_v61  ;;  %v778_v30 = vadd.f32 %v777_v39, %v776_v60  ;;  %v779_v52 = vmul.f32 %v2520_v3, %v2360_v38 }
  0xb4   :  { %v791_v25 = vmul.f32 %v2504_v53, %v2369_v46  ;;  %v792_v23 = vmul.f32 %v2506_v5, %v2325_v44  ;;  %v1199_v12 = vclz %v1819_v7  ;;  %v1437_v43 = vsub.s32 32, %v1436_v14 }
  0xb5   :  { %v2555_v8 = vadd.f32 %v782_v42, %v781_v63  ;;  %v2557_v56 = vand.u32 3, %v930_v26  ;;  %v2559_v41 = vand.u32 3, %v1037_v21  ;;  %v1429_v16 = vand.u32 8388607, %v3002_v11 }
  0xb6   :  { %v2563_v19 = vadd.f32 %v787_v20, %v786_v4  ;;  %v796_v28 = vmul.f32 %v2513_v40, %v2369_v46  ;;  %v797_v9 = vmul.f32 %v2515_v36, %v2325_v44  ;;  %v926_v61 = vsel %vm843_vm15, %v925_v45, %v924_v32 }
  0xb7   :  { %v2571_v15 = vadd.f32 %v779_v52, %v778_v30  ;;  %v2575_v26 = vmul.f32 %v2545_v17, %v2360_v38  ;;  %v2579_v60 = vmul.f32 %v2547_v18, %v2360_v38  ;;  %v2583_v39 = vmul.f32 %v2520_v3, %v2371_v1 }
  0xb8   :  { %v2585_v7 = vadd.f32 %v792_v23, %v791_v25  ;;  %v1820_v63 = vadd.s32 4294967294, %v1199_v12  ;;  %v1448_v42 = vshll.u32 %v1948_v35, %v1436_v14  ;;  %v1449_v32 = vshrl.u32 %v1949_v37, %v1437_v43 }
  0xb9   :  { %v2591_v21 = vmul.f32 %v2545_v17, %v2371_v1  ;;  %v2595_v4 = vmul.f32 %v2508_v13, %v2369_v46  ;;  %v929_v38 = vsel %vm2485_vm12, %v2111_v27, %v926_v61  ;;  %v2600_v20 = vshrl.u32 %v1434_v51, 5 }
  0xba   :  { %v2602_v45 = vadd.f32 %v797_v9, %v796_v28  ;;  %v2606_v30 = vmul.f32 %v2517_v24, %v2325_v44  ;;  %v1439_v52 = vshll.u32 %v3003_v29, %v1436_v14  ;;  %v1442_v25 = vshll.u32 %v1946_v31, %v1436_v14 }
  0xbb   :  { %v1440_v23 = vshrl.u32 %v1946_v31, %v1437_v43  ;;  %v1443_v46 = vshrl.u32 %v1947_v33, %v1437_v43  ;;  %v1445_v12 = vshll.u32 %v1947_v33, %v1436_v14  ;;  %v1446_v27 = vshrl.u32 %v1948_v35, %v1437_v43 }
  0xbc   :  { %1880 = vcosq.f32 %v929_v38  ;;  %v1187_v48 = vadd.s32 %v2435_v0, %v2408_v6  ;;  %vm1821_vm0 = vcmp.lt.s32.totalorder %v1820_v63, 0  ;;  %v1450_v51 = vor.u32 %v1449_v32, %v1448_v42 }
  0xbd   :  { %v1202_v44 = vsel %vm1821_vm0, 0, %v1820_v63  ;;  %v1451_v28 = vshll.u32 %v1949_v37, %v1436_v14  ;;  %v3017_v9 = vmov 1326507024   ;;  %vm1457_vm1 = vcmp.lt.s32.totalorder %v2600_v20, 4 }
  0xbe   :  { %v1452_v61 = vshrl.u32 %v3017_v9, %v1437_v43  ;;  %1882 = vsinq.f32 %v929_v38  ;;  %v1203_v31 = vsub.s32 32, %v1202_v44  ;;  %v1204_v11 = vshll.u32 %v2497_v50, %v1202_v44 }
  0xbf   :  { %v1430_v33 = vor.u32 8388608, %v1429_v16  ;;  %v1207_v29 = vsub.s32 4294967266, %v1202_v44  ;;  %v1441_v35 = vor.u32 %v1440_v23, %v1439_v52  ;;  %v1444_v49 = vor.u32 %v1443_v46, %v1442_v25 }
  0xc0   :  { %v1447_v59 = vor.u32 %v1446_v27, %v1445_v12  ;;  %v1205_v34 = vshrl.u32 %v1187_v48, %v1203_v31  ;;  %vm1454_vm2 = vcmp.lt.s32.totalorder %v2600_v20, 1  ;;  %vm1456_vm3 = vcmp.lt.s32.totalorder %v2600_v20, 3 }
  0xc1   :  { %v1463_v37 = vsel %vm1457_vm1, %v1450_v51, 920167782  ;;  %v806_v6 = vmul.f32 %v2504_v53, %v2410_v47  ;;  %v807_v0 = vmul.f32 %v2506_v5, %v2418_v58  ;;  %v1208_v50 = vadd.s32 127, %v1207_v29 }
  0xc2   :  { %v1453_v14 = vor.u32 %v1452_v61, %v1451_v28  ;;  %v809_v16 = vmul.f32 %v2520_v3, %v2474_v57  ;;  %v1206_v63 = vor.u32 %v1205_v34, %v1204_v11  ;;  %v3018_v42 = vmov 683565275  }
  0xc3   :  { %v1438_v32 = vshrl.u32 %v3018_v42, %v1437_v43  ;;  %vm1455_vm4 = vcmp.lt.s32.totalorder %v2600_v20, 2  ;;  %v1209_v38 = vshll.u32 %v1208_v50, 23  ;;  %v1459_v52 = vsel %vm1457_vm1, %v1447_v59, 2102212464 }
  0xc4   :  { %v1462_v53 = vsel %vm1454_vm2, %v1441_v35, %v1444_v49  ;;  %v1464_v5 = vsel %vm1456_vm3, %v1447_v59, %v1463_v37  ;;  %v811_v29 = vmul.f32 %v2513_v40, %v2410_v47  ;;  %v812_v34 = vmul.f32 %v2515_v36, %v2418_v58 }
  0xc5   :  { %v1466_v3 = vsel %vm1454_vm2, %v1444_v49, %v1447_v59  ;;  %v1470_v11 = vshll.u32 %v1430_v33, 8  ;;  %v816_v43 = vmul.f32 %v2508_v13, %v2410_v47  ;;  %vm1133_vm5 = vcmp.lt.s32.totalorder %v2202_v55, 0 }
  0xc6   :  { %v1210_v25 = vor.u32 4788187, %v1209_v38  ;;  %v1213_v23 = vcvt.s32.f32 %v1206_v63  ;;  %v1467_v46 = vsel %vm1457_vm1, %v1453_v14, 1326507024  ;;  %v1881_v12 = vpop.eup %1880  ;;  %vm936_vm6 = vcmp.eq.s32.totalorder %v2557_v56, 0 }
  0xc7   :  { %vm939_vm7 = vcmp.eq.s32.totalorder %v2557_v56, 2  ;;  %vm1040_vm8 = vcmp.eq.s32.totalorder %v2559_v41, 0  ;;  %v1458_v40 = vsel %vm1454_vm2, %v1438_v32, %v1441_v35  ;;  %v1460_v47 = vsel %vm1456_vm3, %v1444_v49, %v1459_v52 }
  0xc8   :  { %v1465_v13 = vsel %vm1455_vm4, %v1462_v53, %v1464_v5  ;;  %v1468_v36 = vsel %vm1456_vm3, %v1450_v51, %v1467_v46  ;;  %v808_v59 = vadd.f32 %v807_v0, %v806_v6  ;;  %v817_v27 = vmul.f32 %v2517_v24, %v2418_v58  ;;  %v1883_v28 = vpop.eup %1882 }
  0xc9   :  { %v1211_v48 = vand.u32 2147483647, %v1210_v25  ;;  %v1469_v44 = vsel %vm1455_vm4, %v1466_v3, %v1468_v36  ;;  %v813_v9 = vadd.f32 %v812_v34, %v811_v29  ;;  %v814_v61 = vmul.f32 %v2545_v17, %v2474_v57 }
  0xca   :  { %v3019_v49 = vand.u32 2147483647, %v2202_v55  ;;  %v2672_v51 = vmul.u32.u64.low %v1470_v11, %v1469_v44  ;;  %v2673_v33 = vmul.u32.u64.high %v1470_v11, %v1469_v44, %v2672_v51  ;;  %vm935_vm10 = vcmp.lt.s32.totalorder %v2557_v56, 2 }
  0xcb   :  { %vm1039_vm11 = vcmp.lt.s32.totalorder %v2559_v41, 2  ;;  %v1214_v58 = vmul.f32 %v1213_v23, %v1211_v48  ;;  %v1461_v24 = vsel %vm1455_vm4, %v1458_v40, %v1460_v47  ;;  %v2685_v17 = vadd.f32 %v2575_v26, %v2555_v8 }
  0xcc   :  { %vm2668_vm9 = vcmp.le.f32.partialorder %v3019_v49, 0.7853982  ;;  %v2679_v35 = vmul.u32.u64.low %v1470_v11, %v1465_v13  ;;  %v2680_v37 = vmul.u32.u64.high %v1470_v11, %v1465_v13, %v2679_v35  ;;  %v2689_v6 = vadd.f32 %v2583_v39, %v2585_v7  ;;  %v1892_v39 = vld [vmem:[#allocation2 + $0x18] sm:$0xff] }
  0xcd   :  { %v803_v0 = vadd.f32 %v2606_v30, %v2595_v4  ;;  %v804_v50 = vmul.f32 %v2547_v18, %v2371_v1  ;;  %v2697_v20 = vadd.f32 %v2591_v21, %v2602_v45  ;;  %v2699_v14 = vadd.f32 %v809_v16, %v808_v59 }
  0xce   :  { %v818_v63 = vadd.f32 %v817_v27, %v816_v43  ;;  %v819_v8 = vmul.f32 %v2547_v18, %v2474_v57  ;;  %v2703_v26 = vadd.f32 %v814_v61, %v813_v9  ;;  %vm933_vm13 = vweird.f32 %v1892_v39 }
  0xcf   :  { %v1215_v7 = vxor.u32 2147483648, %v1214_v58  ;;  %v1477_v42 = vmul.u32 %v1470_v11, %v1461_v24  ;;  %vm1479_vm15 = vc.u32 %v2673_v33, %v2679_v35  ;;  %v937_v1 = vxor.u32 2147483648, %v1883_v28 }
  0xd0   :  { %v940_v4 = vxor.u32 2147483648, %v1881_v12  ;;  %vm1043_vm12 = vcmp.eq.s32.totalorder %v2559_v41, 2  ;;  %v1480_v21 = vadd.s32 1, %v2680_v37  ;;  %v2711_v45 = vadd.f32 %v2579_v60, %v2563_v19 }
  0xd1   :  { %v2713_v57 = vadd.f32 %v804_v50, %v803_v0  ;;  %v1066_v18 = vmul.f32 0.9425659, %v2571_v15  ;;  %v1067_v30 = vmul.f32 0.3254664, %v2685_v17  ;;  %v2717_v16 = vadd.f32 %v819_v8, %v818_v63 }
  0xd2   :  { %v1081_v32 = vmul.f32 0.9425659, %v2689_v6  ;;  %v1082_v38 = vmul.f32 0.3254664, %v2697_v20  ;;  %v1481_v52 = vsel %vm1479_vm15, %v1480_v21, %v2680_v37  ;;  %v1096_v53 = vmul.f32 0.9425659, %v2699_v14 }
  0xd3   :  { %v1097_v5 = vmul.f32 0.3254664, %v2703_v26  ;;  %v1216_v19 = vsel %vm1133_vm5, %v1215_v7, %v1214_v58  ;;  %v1482_v60 = vadd.s32 %v1481_v52, %v1477_v42  ;;  %v938_v29 = vsel %vm936_vm6, %v1881_v12, %v937_v1 }
  0xd4   :  { %v941_v34 = vsel %vm939_vm7, %v940_v4, %v1883_v28  ;;  %v1042_v3 = vsel %vm1040_vm8, %v1881_v12, %v937_v1  ;;  %v1045_v11 = vsel %vm1043_vm12, %v940_v4, %v1883_v28  ;;  %v837_v43 = vadd.f32 %v2481_v10, %v2530_v2 }
  0xd5   :  { %v1111_v25 = vmul.f32 -0.18827581, %v2571_v15  ;;  %v1112_v23 = vmul.f32 -0.16051579, %v2685_v17  ;;  %v1483_v46 = vadd.s32 536870912, %v1482_v60  ;;  %v1068_v40 = vadd.f32 %v1067_v30, %v1066_v18 }
  0xd6   :  { %v1069_v47 = vmul.f32 0.07510711, %v2711_v45  ;;  %v1084_v13 = vmul.f32 0.07510711, %v2713_v57  ;;  %v1219_v12 = vsel %vm2668_vm9, %v2202_v55, %v1216_v19  ;;  %v942_v36 = vsel %vm935_vm10, %v938_v29, %v941_v34 }
  0xd7   :  { %v1046_v10 = vsel %vm1039_vm11, %v1042_v3, %v1045_v11  ;;  %v1217_v2 = vsub.s32 4, %v2491_v54  ;;  %v2748_v59 = vshrl.u32 %v1483_v46, 30  ;;  %v1083_v27 = vadd.f32 %v1082_v38, %v1081_v32  ;;  %v3022_v38 = vld [vmem:[#allocation9_spill] sm:$0xff] }
  0xd8   :  { %v1098_v48 = vadd.f32 %v1097_v5, %v1096_v53  ;;  %v1099_v44 = vmul.f32 0.07510711, %v2717_v16  ;;  %v1114_v28 = vmul.f32 0.021257306, %v2711_v45  ;;  %v1113_v9 = vadd.f32 %v1112_v23, %v1111_v25 }
  0xd9   :  { %v1117_v61 = vmul.f32 -0.18827581, %v2689_v6  ;;  %v1118_v49 = vmul.f32 -0.16051579, %v2697_v20  ;;  %1884 = vcosq.f32 %v1219_v12  ;;  %v943_v56 = vsel %vm933_vm13, nan, %v942_v36 }
  0xda   :  { %v1047_v41 = vsel %vm933_vm13, nan, %v1046_v10  ;;  %1886 = vsinq.f32 %v1219_v12  ;;  %v1485_v51 = vshll.u32 %v2748_v59, 30  ;;  %v2757_v58 = vadd.f32 %v1069_v47, %v1068_v40  ;;  %v3023_v40 = vld [vmem:[#allocation10_spill] sm:$0xff] }
  0xdb   :  { %v1123_v24 = vmul.f32 -0.18827581, %v2699_v14  ;;  %v1124_v37 = vmul.f32 -0.16051579, %v2703_v26  ;;  %v1218_v0 = vsel %vm1133_vm5, %v1217_v2, %v2491_v54  ;;  %v832_v50 = vadd.f32 %v2543_v62, %v2446_v22 }
  0xdc   :  { %v2766_v63 = vadd.f32 %v1084_v13, %v1083_v27  ;;  %v2768_v8 = vadd.f32 %v1099_v44, %v1098_v48  ;;  %v1120_v39 = vmul.f32 0.021257306, %v2713_v57  ;;  %v1048_v7 = vmul.f32 -0.32198605, %v943_v56 }
  0xdd   :  { %v1049_v42 = vmul.f32 0.08885058, %v1047_v41  ;;  %v1115_v1 = vadd.f32 %v1114_v28, %v1113_v9  ;;  %v1119_v4 = vadd.f32 %v1118_v49, %v1117_v61  ;;  %v1054_v21 = vmul.f32 0.8255261, %v943_v56 }
  0xde   :  { %v1055_v18 = vmul.f32 -0.46106213, %v1047_v41  ;;  %v1220_v30 = vsel %vm2668_vm9, 0, %v1218_v0  ;;  %v2773_v55 = vsub.s32 %v1482_v60, %v1485_v51  ;;  %v1051_v54 = vmul.f32 0.08885058, %v943_v56  ;;  %v1893_v51 = vld [vmem:[#allocation2 + $0x20] sm:$0xff] }
  0xdf   :  { %v1125_v32 = vadd.f32 %v1124_v37, %v1123_v24  ;;  %v1126_v22 = vmul.f32 0.021257306, %v2717_v16  ;;  %v2777_v62 = vmul.f32 0.23799326, %v2757_v58  ;;  %v2780_v52 = vadd.f32 %v837_v43, %v3022_v38 }
  0xe0   :  { %v1052_v53 = vmul.f32 0.32198605, %v1047_v41  ;;  %v1057_v5 = vmul.f32 -0.46106213, %v943_v56  ;;  %v1058_v19 = vmul.f32 -0.8255261, %v1047_v41  ;;  %v1050_v29 = vadd.f32 %v1049_v42, %v1048_v7 }
  0xe1   :  { %v1121_v34 = vadd.f32 %v1120_v39, %v1119_v4  ;;  %v1224_v3 = vand.u32 3, %v1220_v30  ;;  %v1327_v31 = vadd.s32 3, %v1220_v30  ;;  %v1056_v11 = vadd.f32 %v1055_v18, %v1054_v21 }
  0xe2   :  { %v1060_v60 = vmul.f32 0.46349934, %v943_v56  ;;  %v1061_v25 = vmul.f32 0.8829084, %v1047_v41  ;;  %v1488_v23 = vsub.s32 0, %v2773_v55  ;;  %v2784_v47 = vadd.f32 %v1115_v1, %v3023_v40 }
  0xe3   :  { %v1885_v46 = vpop.eup %1884  ;;  %v2786_v13 = vadd.f32 %v1126_v22, %v1125_v32  ;;  %v2789_v43 = vmul.f32 0.23799326, %v2766_v63  ;;  %v2792_v12 = vmul.f32 0.23799326, %v2768_v8  ;;  %v1053_v10 = vadd.f32 %v1052_v53, %v1051_v54 }
  0xe4   :  { %v1887_v36 = vpop.eup %1886  ;;  %v1059_v2 = vadd.f32 %v1058_v19, %v1057_v5  ;;  %v1063_v27 = vmul.f32 0.8829084, %v943_v56  ;;  %v1064_v48 = vmul.f32 -0.46349934, %v1047_v41  ;;  %v2794_v44 = vadd.f32 %v1121_v34, %v832_v50 }
  0xe5   :  { %vm1225_vm14 = vcmp.lt.s32.totalorder %v1224_v3, 2  ;;  %vm1226_vm0 = vcmp.eq.s32.totalorder %v1224_v3, 0  ;;  %v1328_v28 = vand.u32 3, %v1327_v31  ;;  %v1062_v9 = vadd.f32 %v1061_v25, %v1060_v60 }
  0xe6   :  { %v1071_v61 = vmul.f32 %v1050_v29, %v2571_v15  ;;  %v1072_v49 = vmul.f32 %v1056_v11, %v2685_v17  ;;  %vm1223_vm1 = vweird.f32 %v1893_v51  ;;  %v1827_v24 = vmin.u32 %v1488_v23, %v2773_v55 }
  0xe7   :  { %v1086_v37 = vmul.f32 %v1050_v29, %v2689_v6  ;;  %v1087_v0 = vmul.f32 %v1056_v11, %v2697_v20  ;;  %v1227_v56 = vxor.u32 2147483648, %v1887_v36  ;;  %v1230_v41 = vxor.u32 2147483648, %v1885_v46 }
  0xe8   :  { %v1065_v50 = vadd.f32 %v1064_v48, %v1063_v27  ;;  %v1076_v39 = vmul.f32 %v1053_v10, %v2571_v15  ;;  %v1077_v7 = vmul.f32 %v1059_v2, %v2685_v17  ;;  %vm1229_vm2 = vcmp.eq.s32.totalorder %v1224_v3, 2 }
  0xe9   :  { %v1091_v42 = vmul.f32 %v1053_v10, %v2689_v6  ;;  %vm1329_vm3 = vcmp.lt.s32.totalorder %v1328_v28, 2  ;;  %vm1330_vm4 = vcmp.eq.s32.totalorder %v1328_v28, 0  ;;  %vm1333_vm5 = vcmp.eq.s32.totalorder %v1328_v28, 2 }
  0xea   :  { %v1073_v1 = vadd.f32 %v1072_v49, %v1071_v61  ;;  %v1074_v4 = vmul.f32 %v1062_v9, %v2711_v45  ;;  %v1092_v21 = vmul.f32 %v1059_v2, %v2697_v20  ;;  %v1490_v18 = vclz %v1827_v24 }
  0xeb   :  { %v1088_v30 = vadd.f32 %v1087_v0, %v1086_v37  ;;  %v1089_v54 = vmul.f32 %v1062_v9, %v2713_v57  ;;  %v1228_v32 = vsel %vm1226_vm0, %v1885_v46, %v1227_v56  ;;  %v1231_v15 = vsel %vm1229_vm2, %v1230_v41, %v1887_v36 }
  0xec   :  { %v1078_v22 = vadd.f32 %v1077_v7, %v1076_v39  ;;  %v1079_v17 = vmul.f32 %v1065_v50, %v2711_v45  ;;  %v1332_v38 = vsel %vm1330_vm4, %v1885_v46, %v1227_v56  ;;  %v1335_v6 = vsel %vm1333_vm5, %v1230_v41, %v1887_v36 }
  0xed   :  { %v1101_v53 = vmul.f32 %v1050_v29, %v2699_v14  ;;  %v1102_v5 = vmul.f32 %v1056_v11, %v2703_v26  ;;  %v2812_v19 = vmul.f32 -0.15022115, %v2757_v58  ;;  %v2815_v20 = vmul.f32 -0.15022115, %v2766_v63 }
  0xee   :  { %v1093_v34 = vadd.f32 %v1092_v21, %v1091_v42  ;;  %v1094_v31 = vmul.f32 %v1065_v50, %v2713_v57  ;;  %v1232_v60 = vsel %vm1225_vm14, %v1228_v32, %v1231_v15  ;;  %v1828_v25 = vadd.s32 4294967294, %v1490_v18 }
  0xef   :  { %v2819_v23 = vadd.f32 %v1074_v4, %v1073_v1  ;;  %v1106_v45 = vmul.f32 %v1053_v10, %v2699_v14  ;;  %v1107_v29 = vmul.f32 %v1059_v2, %v2703_v26  ;;  %v1336_v11 = vsel %vm1329_vm3, %v1332_v38, %v1335_v6 }
  0xf0   :  { %v2824_v46 = vadd.f32 %v1079_v17, %v1078_v22  ;;  %v2826_v40 = vadd.f32 %v1089_v54, %v1088_v30  ;;  %v1478_v36 = vadd.s32 %v2679_v35, %v2673_v33  ;;  %vm1829_vm6 = vcmp.lt.s32.totalorder %v1828_v25, 0  ;;  %v3024_v35 = vld [vmem:[#allocation8_spill] sm:$0xff] }
  0xf1   :  { %v1103_v57 = vadd.f32 %v1102_v5, %v1101_v53  ;;  %v1104_v3 = vmul.f32 %v1062_v9, %v2717_v16  ;;  %v1233_v27 = vsel %vm1223_vm1, nan, %v1232_v60  ;;  %v1493_v48 = vsel %vm1829_vm6, 0, %v1828_v25 }
  0xf2   :  { %v1337_v14 = vsel %vm1223_vm1, nan, %v1336_v11  ;;  %v1494_v10 = vsub.s32 32, %v1493_v48  ;;  %v1495_v26 = vshll.u32 %v2773_v55, %v1493_v48  ;;  %v1498_v2 = vsub.s32 4294967266, %v1493_v48 }
  0xf3   :  { %v2834_v28 = vadd.f32 %v1094_v31, %v1093_v34  ;;  %v1108_v61 = vadd.f32 %v1107_v29, %v1106_v45  ;;  %v1109_v49 = vmul.f32 %v1065_v50, %v2717_v16  ;;  %v1362_v33 = vmul.f32 0.89469206, %v2819_v23 }
  0xf4   :  { %vm1424_vm7 = vcmp.lt.s32.totalorder %v3024_v35, 0  ;;  %v2841_v9 = vadd.f32 %v2786_v13, %v2780_v52  ;;  %v2844_v51 = vmul.f32 -0.15022115, %v2768_v8  ;;  %v1496_v24 = vshrl.u32 %v1478_v36, %v1494_v10 }
  0xf5   :  { %v1499_v37 = vadd.s32 127, %v1498_v2  ;;  %v2846_v55 = vadd.f32 %v1104_v3, %v1103_v57  ;;  %v1338_v0 = vmul.f32 0.95280725, %v1233_v27  ;;  %v1339_v56 = vmul.f32 0.18846117, %v1337_v14 }
  0xf6   :  { %v1364_v41 = vmul.f32 -0.37800172, %v2824_v46  ;;  %v1344_v16 = vmul.f32 -0.1395473, %v1233_v27  ;;  %v1345_v50 = vmul.f32 -0.4243261, %v1337_v14  ;;  %v1497_v52 = vor.u32 %v1496_v24, %v1495_v26 }
  0xf7   :  { %v3025_v39 = vand.u32 2147483647, %v3024_v35  ;;  %v1500_v13 = vshll.u32 %v1499_v37, 23  ;;  %v2855_v42 = vadd.f32 %v1109_v49, %v1108_v61  ;;  %v1363_v1 = vadd.f32 %v1362_v33, %v2777_v62 }
  0xf8   :  { %v1377_v4 = vmul.f32 0.89469206, %v2826_v40  ;;  %v1379_v21 = vmul.f32 -0.37800172, %v2834_v28  ;;  %v1341_v18 = vmul.f32 -0.18846117, %v1233_v27  ;;  %v1504_v54 = vcvt.s32.f32 %v1497_v52 }
  0xf9   :  { %vm2851_vm8 = vcmp.le.f32.partialorder %v3025_v39, 0.7853982  ;;  %v1501_v30 = vor.u32 4788187, %v1500_v13  ;;  %v1508_v32 = vsub.s32 4, %v2748_v59  ;;  %v1340_v15 = vadd.f32 %v1339_v56, %v1338_v0 }
  0xfa   :  { %v1342_v22 = vmul.f32 0.95280725, %v1337_v14  ;;  %v1347_v17 = vmul.f32 0.4243261, %v1233_v27  ;;  %v1348_v38 = vmul.f32 -0.1395473, %v1337_v14  ;;  %v1346_v6 = vadd.f32 %v1345_v50, %v1344_v16 }
  0xfb   :  { %v1350_v53 = vmul.f32 0.26960146, %v1233_v27  ;;  %v1351_v5 = vmul.f32 -0.8856804, %v1337_v14  ;;  %v1502_v34 = vand.u32 2147483647, %v1501_v30  ;;  %v2861_v31 = vadd.f32 %v1364_v41, %v1363_v1 }
  0xfc   :  { %v1378_v62 = vadd.f32 %v1377_v4, %v2789_v43  ;;  %v1392_v60 = vmul.f32 0.89469206, %v2846_v55  ;;  %v1402_v25 = vmul.f32 0.03782482, %v2819_v23  ;;  %v1404_v45 = vmul.f32 0.18379632, %v2824_v46 }
  0xfd   :  { %v1408_v29 = vmul.f32 0.03782482, %v2826_v40  ;;  %v1505_v11 = vmul.f32 %v1504_v54, %v1502_v34  ;;  %v1509_v36 = vsel %vm1424_vm7, %v1508_v32, %v2748_v59  ;;  %v1343_v57 = vadd.f32 %v1342_v22, %v1341_v18 }
  0xfe   :  { %v1349_v3 = vadd.f32 %v1348_v38, %v1347_v17  ;;  %v1353_v48 = vmul.f32 0.8856804, %v1233_v27  ;;  %v1354_v10 = vmul.f32 0.26960146, %v1337_v14  ;;  %v1352_v26 = vadd.f32 %v1351_v5, %v1350_v53 }
  0xff   :  { %v1356_v43 = vmul.f32 %v1340_v15, %v2757_v58  ;;  %v1357_v2 = vmul.f32 %v1346_v6, %v2819_v23  ;;  %v1506_v61 = vxor.u32 2147483648, %v1505_v11  ;;  %v2873_v49 = vadd.f32 %v1379_v21, %v1378_v62 }
 0x100   :  { %v1393_v33 = vadd.f32 %v1392_v60, %v2792_v12  ;;  %v1394_v24 = vmul.f32 -0.37800172, %v2855_v42  ;;  %v1403_v37 = vadd.f32 %v1402_v25, %v2812_v19  ;;  %v1409_v59 = vadd.f32 %v1408_v29, %v2815_v20 }
 0x101   :  { %v1410_v0 = vmul.f32 0.18379632, %v2834_v28  ;;  %v1414_v27 = vmul.f32 0.03782482, %v2846_v55  ;;  %v1507_v14 = vsel %vm1424_vm7, %v1506_v61, %v1505_v11  ;;  %v1355_v56 = vadd.f32 %v1354_v10, %v1353_v48 }
 0x102   :  { %v1366_v41 = vmul.f32 %v1343_v57, %v2757_v58  ;;  %v1510_v12 = vsel %vm2851_vm8, %v3024_v35, %v1507_v14  ;;  %v1511_v16 = vsel %vm2851_vm8, 0, %v1509_v36  ;;  %v1358_v19 = vadd.f32 %v1357_v2, %v1356_v43 }
 0x103   :  { %v1359_v20 = vmul.f32 %v1352_v26, %v2824_v46  ;;  %v1367_v50 = vmul.f32 %v1349_v3, %v2819_v23  ;;  %1888 = vcosq.f32 %v1510_v12  ;;  %v1371_v39 = vmul.f32 %v1340_v15, %v2766_v63 }
 0x104   :  { %v1372_v52 = vmul.f32 %v1346_v6, %v2826_v40  ;;  %v2893_v13 = vadd.f32 %v1394_v24, %v1393_v33  ;;  %1890 = vsinq.f32 %v1510_v12  ;;  %v1405_v58 = vadd.f32 %v1404_v45, %v1403_v37 }
 0x105   :  { %v1415_v1 = vadd.f32 %v1414_v27, %v2844_v51  ;;  %v1416_v4 = vmul.f32 0.18379632, %v2855_v42  ;;  %v1618_v7 = vadd.s32 3, %v1511_v16  ;;  %v1381_v21 = vmul.f32 %v1343_v57, %v2766_v63 }
 0x106   :  { %v1411_v18 = vadd.f32 %v1410_v0, %v1409_v59  ;;  %v1515_v30 = vand.u32 3, %v1511_v16  ;;  %v1711_v23 = vmul.f32 0.089638375, %v2861_v31  ;;  %v2899_v54 = vadd.f32 %v1359_v20, %v1358_v19 }
 0x107   :  { %v1368_v32 = vadd.f32 %v1367_v50, %v1366_v41  ;;  %v1369_v22 = vmul.f32 %v1355_v56, %v2824_v46  ;;  %v1382_v17 = vmul.f32 %v1349_v3, %v2826_v40  ;;  %v1373_v38 = vadd.f32 %v1372_v52, %v1371_v39 }
 0x108   :  { %v1374_v53 = vmul.f32 %v1352_v26, %v2834_v28  ;;  %v1386_v51 = vmul.f32 %v1340_v15, %v2768_v8  ;;  %v1387_v5 = vmul.f32 %v1346_v6, %v2846_v55  ;;  %vm1514_vm9 = vweird.f32 %v3024_v35 }
 0x109   :  { %v1396_v63 = vmul.f32 %v1343_v57, %v2768_v8  ;;  %v1397_v34 = vmul.f32 %v1349_v3, %v2846_v55  ;;  %v1619_v62 = vand.u32 3, %v1618_v7  ;;  %v1710_v60 = vmul.f32 0.07729087, %v2899_v54 }
 0x10a   :  { %v1406_v46 = vadd.f32 %v1405_v58, %v2784_v47  ;;  %v2912_v40 = vadd.f32 %v1411_v18, %v2794_v44  ;;  %v1417_v25 = vadd.f32 %v1416_v4, %v1415_v1  ;;  %v1717_v45 = vmul.f32 0.089638375, %v2873_v49 }
 0x10b   :  { %v2915_v15 = vadd.f32 %v1369_v22, %v1368_v32  ;;  %v1383_v6 = vadd.f32 %v1382_v17, %v1381_v21  ;;  %v1384_v29 = vmul.f32 %v1355_v56, %v2834_v28  ;;  %vm1520_vm10 = vcmp.eq.s32.totalorder %v1515_v30, 2 }
 0x10c   :  { %v2918_v8 = vadd.f32 %v1374_v53, %v1373_v38  ;;  %v1388_v55 = vadd.f32 %v1387_v5, %v1386_v51  ;;  %v1389_v11 = vmul.f32 %v1352_v26, %v2855_v42  ;;  %v1399_v36 = vmul.f32 %v1355_v56, %v2855_v42 }
 0x10d   :  { %v1889_v47 = vpop.eup %1888  ;;  %v1398_v57 = vadd.f32 %v1397_v34, %v1396_v63  ;;  %vm1624_vm11 = vcmp.eq.s32.totalorder %v1619_v62, 2  ;;  %v1712_v44 = vadd.f32 %v1711_v23, %v1710_v60  ;;  %v1713_v3 = vmul.f32 -0.07273426, %v2915_v15 }
 0x10e   :  { %v1891_v48 = vpop.eup %1890  ;;  %vm1517_vm13 = vcmp.eq.s32.totalorder %v1515_v30, 0  ;;  %v1521_v10 = vxor.u32 2147483648, %v1889_v47  ;;  %vm1621_vm15 = vcmp.eq.s32.totalorder %v1619_v62, 0  ;;  %v1716_v28 = vmul.f32 0.07729087, %v2918_v8 }
 0x10f   :  { %vm1516_vm12 = vcmp.lt.s32.totalorder %v1515_v30, 2  ;;  %v1518_v43 = vxor.u32 2147483648, %v1891_v48  ;;  %vm1620_vm14 = vcmp.lt.s32.totalorder %v1619_v62, 2  ;;  %v1723_v2 = vmul.f32 0.089638375, %v2893_v13 }
 0x110   :  { %v2925_v26 = vadd.f32 %v1384_v29, %v1383_v6  ;;  %v2927_v42 = vadd.f32 %v1389_v11, %v1388_v55  ;;  %v1522_v61 = vsel %vm1520_vm10, %v1521_v10, %v1891_v48  ;;  %v1626_v33 = vsel %vm1624_vm11, %v1521_v10, %v1891_v48 }
 0x111   :  { %v2930_v24 = vadd.f32 %v1399_v36, %v1398_v57  ;;  %v1519_v37 = vsel %vm1517_vm13, %v1889_v47, %v1518_v43  ;;  %v1623_v59 = vsel %vm1621_vm15, %v1889_v47, %v1518_v43  ;;  %v1714_v0 = vadd.f32 %v1713_v3, %v1712_v44 }
 0x112   :  { %v1523_v27 = vsel %vm1516_vm12, %v1519_v37, %v1522_v61  ;;  %v1627_v14 = vsel %vm1620_vm14, %v1623_v59, %v1626_v33  ;;  %v1718_v56 = vadd.f32 %v1717_v45, %v1716_v28  ;;  %v1719_v41 = vmul.f32 -0.07273426, %v2925_v26 }
 0x113   :  { %v1524_v12 = vsel %vm1514_vm9, nan, %v1523_v27  ;;  %v1628_v16 = vsel %vm1514_vm9, nan, %v1627_v14  ;;  %v1722_v19 = vmul.f32 0.07729087, %v2927_v42  ;;  %v2939_v20 = vmul.f32 -0.07273426, %v2930_v24 }
 0x114   :  { %v2942_v50 = vadd.f32 %v1417_v25, %v2841_v9  ;;  %v1629_v39 = vmul.f32 0.9277703, %v1524_v12  ;;  %v1631_v52 = vmul.f32 -0.21772015, %v1628_v16  ;;  %v1633_v58 = vmul.f32 -0.0373708, %v1524_v12 }
 0x115   :  { %v1635_v1 = vmul.f32 -0.8622636, %v1628_v16  ;;  %v1637_v4 = vmul.f32 -0.37127063, %v1524_v12  ;;  %v1639_v7 = vmul.f32 -0.45726973, %v1628_v16  ;;  %v2944_v21 = vadd.f32 %v1714_v0, %v1406_v46 }
 0x116   :  { %v1630_v18 = vadd.f32 -0.0005893833, %v1629_v39  ;;  %v1634_v30 = vadd.f32 0.0009823055, %v1633_v58  ;;  %v1641_v35 = vmul.f32 0.16696545, %v1524_v12  ;;  %v2946_v23 = vadd.f32 %v1719_v41, %v1718_v56 }
 0x117   :  { %v1638_v32 = vadd.f32 -0.0015716887, %v1637_v4  ;;  %v1643_v22 = vmul.f32 0.7166445, %v1628_v16  ;;  %v1645_v17 = vmul.f32 0.6658408, %v1524_v12  ;;  %v2948_v38 = vadd.f32 %v1723_v2, %v1722_v19 }
 0x118   :  { %v1632_v9 = vadd.f32 %v1631_v52, %v1630_v18  ;;  %v1636_v53 = vadd.f32 %v1635_v1, %v1634_v30  ;;  %v1642_v51 = vadd.f32 -0.19256862, %v1641_v35  ;;  %v1647_v5 = vmul.f32 -0.027790133, %v1628_v16 }
 0x119   :  { %v1640_v63 = vadd.f32 %v1639_v7, %v1638_v32  ;;  %v1646_v34 = vadd.f32 0.32094768, %v1645_v17  ;;  %v1649_v62 = vmul.f32 0.35353845, %v1524_v12  ;;  %v1651_v60 = vmul.f32 -0.28611052, %v1628_v16 }
 0x11a   :  { %v1644_v46 = vadd.f32 %v1643_v22, %v1642_v51  ;;  %v1653_v25 = vmul.f32 0.13974275, %v1524_v12  ;;  %v1655_v45 = vmul.f32 0.58922136, %v1628_v16  ;;  %v1657_v6 = vmul.f32 0.5478662, %v1524_v12 }
 0x11b   :  { %v1648_v29 = vadd.f32 %v1647_v5, %v1646_v34  ;;  %v1650_v55 = vadd.f32 -0.5135163, %v1649_v62  ;;  %v1659_v11 = vmul.f32 -0.025042025, %v1628_v16  ;;  %v1661_v36 = vmul.f32 0.29001287, %v1524_v12 }
 0x11c   :  { %v1654_v47 = vadd.f32 0.23399512, %v1653_v25  ;;  %v1658_v57 = vadd.f32 -0.38999188, %v1657_v6  ;;  %v1663_v44 = vmul.f32 -0.23660928, %v1628_v16  ;;  %v1665_v3 = vmul.f32 %v1632_v9, %v2899_v54 }
 0x11d   :  { %v1652_v48 = vadd.f32 %v1651_v60, %v1650_v55  ;;  %v1662_v10 = vadd.f32 0.623987, %v1661_v36  ;;  %v1666_v28 = vmul.f32 %v1644_v46, %v2861_v31  ;;  %v1670_v43 = vmul.f32 %v1636_v53, %v2899_v54 }
 0x11e   :  { %v1656_v2 = vadd.f32 %v1655_v45, %v1654_v47  ;;  %v1660_v61 = vadd.f32 %v1659_v11, %v1658_v57  ;;  %v1671_v33 = vmul.f32 %v1648_v29, %v2861_v31  ;;  %v1675_v37 = vmul.f32 %v1640_v63, %v2899_v54 }
 0x11f   :  { %v1664_v59 = vadd.f32 %v1663_v44, %v1662_v10  ;;  %v1667_v0 = vadd.f32 %v1666_v28, %v1665_v3  ;;  %v1676_v27 = vmul.f32 %v1652_v48, %v2861_v31  ;;  %v1680_v14 = vmul.f32 %v1632_v9, %v2918_v8 }
 0x120   :  { %v1668_v56 = vmul.f32 %v1656_v2, %v2915_v15  ;;  %v1672_v41 = vadd.f32 %v1671_v33, %v1670_v43  ;;  %v1673_v12 = vmul.f32 %v1660_v61, %v2915_v15  ;;  %v1681_v16 = vmul.f32 %v1644_v46, %v2873_v49 }
 0x121   :  { %v1677_v19 = vadd.f32 %v1676_v27, %v1675_v37  ;;  %v1678_v39 = vmul.f32 %v1664_v59, %v2915_v15  ;;  %v1683_v52 = vmul.f32 %v1656_v2, %v2925_v26  ;;  %v1685_v54 = vmul.f32 %v1636_v53, %v2918_v8 }
 0x122   :  { %v1669_v58 = vadd.f32 %v1668_v56, %v1667_v0  ;;  %v1674_v1 = vadd.f32 %v1673_v12, %v1672_v41  ;;  %v1682_v4 = vadd.f32 %v1681_v16, %v1680_v14  ;;  %v1686_v31 = vmul.f32 %v1648_v29, %v2873_v49 }
 0x123   :  { %v1679_v7 = vadd.f32 %v1678_v39, %v1677_v19  ;;  %v1688_v18 = vmul.f32 %v1660_v61, %v2925_v26  ;;  %v1690_v30 = vmul.f32 %v1640_v63, %v2918_v8  ;;  %v1691_v35 = vmul.f32 %v1652_v48, %v2873_v49 }
 0x124   :  { %v1684_v32 = vadd.f32 %v1683_v52, %v1682_v4  ;;  %v1687_v22 = vadd.f32 %v1686_v31, %v1685_v54  ;;  %v1693_v15 = vmul.f32 %v1664_v59, %v2925_v26  ;;  %v1695_v17 = vmul.f32 %v1632_v9, %v2927_v42  ;;  %1746 = vst [vmem:[#allocation5] sm:$0xff] %v1669_v58 }
 0x125   :  { %1748 = vst [vmem:[#allocation5 + $0x8] sm:$0xff] %v1674_v1  ;;  %v1692_v51 = vadd.f32 %v1691_v35, %v1690_v30  ;;  %v1696_v5 = vmul.f32 %v1644_v46, %v2893_v13  ;;  %v1698_v34 = vmul.f32 %v1656_v2, %v2930_v24  ;;  %v1700_v62 = vmul.f32 %v1636_v53, %v2927_v42 }
 0x126   :  { %1750 = vst [vmem:[#allocation5 + $0x10] sm:$0xff] %v1679_v7  ;;  %v1689_v60 = vadd.f32 %v1688_v18, %v1687_v22  ;;  %v1701_v8 = vmul.f32 %v1648_v29, %v2893_v13  ;;  %v1703_v49 = vmul.f32 %v1660_v61, %v2930_v24  ;;  %v1705_v25 = vmul.f32 %v1640_v63, %v2927_v42 }
 0x127   :  { %1754 = vst [vmem:[#allocation5 + $0x20] sm:$0xff] %v1684_v32  ;;  %v1694_v26 = vadd.f32 %v1693_v15, %v1692_v51  ;;  %v1697_v9 = vadd.f32 %v1696_v5, %v1695_v17  ;;  %v1706_v45 = vmul.f32 %v1652_v48, %v2893_v13  ;;  %v1708_v6 = vmul.f32 %v1664_v59, %v2930_v24 }
 0x128   :  { %v1702_v46 = vadd.f32 %v1701_v8, %v1700_v62  ;;  %v1728_v55 = vmul.f32 0.15394679, %v1669_v58  ;;  %v1729_v11 = vmul.f32 -0.017163469, %v1674_v1  ;;  %v1731_v36 = vmul.f32 -0.1266605, %v1679_v7 }
 0x129   :  { %1756 = vst [vmem:[#allocation5 + $0x28] sm:$0xff] %v1689_v60  ;;  %v1699_v53 = vadd.f32 %v1698_v34, %v1697_v9  ;;  %v1707_v47 = vadd.f32 %v1706_v45, %v1705_v25  ;;  %v1734_v57 = vmul.f32 0.15394679, %v1684_v32  ;;  %v1735_v29 = vmul.f32 -0.017163469, %v1689_v60  ;;  %1758 = vst [vmem:[#allocation5 + $0x30] sm:$0xff] %v1694_v26 }
 0x12a   :  { %v1704_v44 = vadd.f32 %v1703_v49, %v1702_v46  ;;  %v1726_v42 = vadd.f32 %v2939_v20, %v2948_v38  ;;  %v1730_v63 = vadd.f32 %v1729_v11, %v1728_v55  ;;  %v1737_v3 = vmul.f32 -0.1266605, %v1694_v26 }
 0x12b   :  { %v1709_v10 = vadd.f32 %v1708_v6, %v1707_v47  ;;  %v1721_v13 = vadd.f32 %v2946_v23, %v2912_v40  ;;  %v1736_v24 = vadd.f32 %v1735_v29, %v1734_v57  ;;  %v1740_v48 = vmul.f32 0.15394679, %v1699_v53  ;;  %1762 = vst [vmem:[#allocation5 + $0x40] sm:$0xff] %v1699_v53 }
 0x12c   :  { %v1732_v28 = vadd.f32 %v1731_v36, %v1730_v63  ;;  %v1741_v43 = vmul.f32 -0.017163469, %v1704_v44  ;;  %1764 = vst [vmem:[#allocation5 + $0x48] sm:$0xff] %v1704_v44  ;;  %v1727_v33 = vadd.f32 %v1726_v42, %v2942_v50 }
 0x12d   :  { %v1738_v2 = vadd.f32 %v1737_v3, %v1736_v24  ;;  %v1743_v61 = vmul.f32 -0.1266605, %v1709_v10  ;;  %1766 = vst [vmem:[#allocation5 + $0x50] sm:$0xff] %v1709_v10 }
 0x12e   :  { %v1733_v37 = vadd.f32 %v1732_v28, %v2944_v21  ;;  %v1742_v20 = vadd.f32 %v1741_v43, %v1740_v48 }
 0x12f   :  { %v1739_v38 = vadd.f32 %v1738_v2, %v1721_v13 }
 0x130   :  { %v1744_v59 = vadd.f32 %v1743_v61, %v1742_v20  ;;  %1752 = vst [vmem:[#allocation5 + $0x18] sm:$0xff] %v1733_v37 }
 0x131   :  { %1760 = vst [vmem:[#allocation5 + $0x38] sm:$0xff] %v1739_v38 }
 0x132   :  { %v1745_v40 = vadd.f32 %v1744_v59, %v1727_v33 }
 0x134   :  { %1768 = vst [vmem:[#allocation5 + $0x58] sm:$0xff] %v1745_v40 }
 0x135   :  { %1927 = shalt.err (!%p1924_p12)
}
 0x136   :  { %s1928_s24 = scalar_lea.hbm %s2999_s1, 1536 }
 0x137   :  { %p1929_p13 = scmp.ne.s32.totalorder %s2999_s1, %s1928_s24  ;;  %p1932_p0 = scmp.lt.u32.totalorder %s1928_s24, %s2999_s1 }
 0x139   :  { %p1934_p1 = pnand %p1932_p0, %p1929_p13 }
 0x13b   :  { %1937 = shalt.err (!%p1934_p1)
}
 0x13c   :  { %1780 = dma.vmem_to_hbm [thread:$0]  %s1775_s20, 1536, %s2999_s1, [#allocation4], %s1943_s16, %s1943_s16, %s1944_s17  }
 0x13d   :  { %1940 = dma.done.wait [#allocation4], 1536  }
 0x13e   :  { %1941 = vsyncadd [#allocation4], 4294965760 }
 0x13f   :  { %1784 = vsyncpa [#allocation3], 1 }
 0x140   :  { %1785 = vsyncpa [#allocation4], 1 }

</bundles_post_ra>
